<compile_context>
chip_gen: v5e
topology: v5e:2x2
jax: 0.10.0
libtpu: 0.0.40
codegen_flags: <defaults>
</compile_context>

<pallas_src>
import math

import jax
import jax.numpy as jnp
from jax import lax
from jax.experimental import pallas as pl
from jax.experimental.pallas import tpu as pltpu

LANE = 128  # TPU lane width: feature dims padded to this for lane-dense vregs/stores.


def _round_up(x, m):
    return (x + m - 1) // m * m


# ---------------------------------------------------------------------------
# Stage 1: fused projections  P = x @ [W0 | W1 | Wq*scale | Wk | Wv]
# ---------------------------------------------------------------------------
def _proj_kernel(x_ref, w_ref, xw0_ref, xw1_ref, q_ref, k_ref, v_ref):
    p = jnp.dot(x_ref[...], w_ref[...], preferred_element_type=jnp.float32)
    xw0_ref[...] = p[:, 0 * LANE:1 * LANE]
    xw1_ref[...] = p[:, 1 * LANE:2 * LANE]
    q_ref[...] = p[:, 2 * LANE:3 * LANE]
    k_ref[...] = p[:, 3 * LANE:4 * LANE]
    v_ref[...] = p[:, 4 * LANE:5 * LANE]


# ---------------------------------------------------------------------------
# Stage 2: per (row-tile i, contraction-tile k) accumulation
# ---------------------------------------------------------------------------
def _gd_main_kernel(a1_ref, a2_ref, xw0_ref, q_ref, xw1_ref, k_ref, v_ref,
                    o_ref, acc_ref):
    kstep = pl.program_id(1)

    @pl.when(kstep == 0)
    def _():
        acc_ref[...] = xw0_ref[...]                    # TAGConv hop-0 term: x @ W0

    a1 = a1_ref[...].astype(jnp.float32)               # 0/1 exact in bf16 -> lossless
    a2 = a2_ref[...].astype(jnp.float32)

    # TAGConv hop-1 term: A1 @ (x @ W1)  (== (A1 @ x) @ W1)
    acc_ref[...] += jnp.dot(a1, xw1_ref[...], preferred_element_type=jnp.float32)

    # edge-masked scaled dot-product attention, no softmax; scale folded into Q
    scores = lax.dot_general(
        q_ref[...], k_ref[...],
        dimension_numbers=(((1,), (1,)), ((), ())),    # Q K^T without materializing K.T
        preferred_element_type=jnp.float32)
    attn = jnp.where(a2 != 0.0, a2 * scores, 0.0)      # robust edge mask
    acc_ref[...] -= jnp.dot(attn, v_ref[...], preferred_element_type=jnp.float32)

    @pl.when(kstep == pl.num_programs(1) - 1)
    def _():
        o_ref[...] = acc_ref[...].astype(o_ref.dtype)


# ---------------------------------------------------------------------------
# Wrapper
# ---------------------------------------------------------------------------
def gd_block(x, a1, a2, w0, w1, wq, wk, wv, *, tm=128, tk=128):
    n, f_in = x.shape
    f_out = w0.shape[1]
    d = wq.shape[1]
    scale = 1.0 / math.sqrt(d)

    # Pad node count to a tile multiple (zero rows/cols contribute nothing).
    n_pad = _round_up(n, max(tm, tk))
    if n_pad != n:
        x = jnp.pad(x, ((0, n_pad - n), (0, 0)))
        a1 = jnp.pad(a1, ((0, n_pad - n), (0, n_pad - n)))
        a2 = jnp.pad(a2, ((0, n_pad - n), (0, n_pad - n)))

    # Adjacency 0/1 values are exact in bf16 -> halves the dominant N^2 HBM traffic.
    a1 = a1.astype(jnp.bfloat16)
    a2 = a2.astype(jnp.bfloat16)

    def pad_w(w):
        return jnp.pad(w.astype(jnp.float32), ((0, 0), (0, LANE - w.shape[1])))

    # One fused projection weight (K = f_in, N = 5*128); fold 1/sqrt(d) into Wq.
    w_fused = jnp.concatenate(
        [pad_w(w0), pad_w(w1), pad_w(wq * scale), pad_w(wk), pad_w(wv)], axis=1)

    panel = jax.ShapeDtypeStruct((n_pad, LANE), jnp.float32)
    xw0, xw1, q, kpanel, v = pl.pallas_call(
        _proj_kernel,
        out_shape=(panel,) * 5,
        grid_spec=pltpu.PrefetchScalarGridSpec(
            num_scalar_prefetch=0,
            grid=(n_pad // tm,),
            in_specs=[
                pl.BlockSpec((tm, f_in), lambda i: (i, 0)),
                pl.BlockSpec((f_in, 5 * LANE), lambda i: (0, 0)),
            ],
            out_specs=tuple(pl.BlockSpec((tm, LANE), lambda i: (i, 0))
                            for _ in range(5)),
        ),
        compiler_params=pltpu.CompilerParams(dimension_semantics=("parallel",)),
    )(x.astype(jnp.float32), w_fused)

    # VMEM budget from the chosen tiles (double-buffered), headroom, capped well
    # under the smallest scoped VMEM (v7x).
    block_bytes = (
        2 * 2 * (tm * tk * 2)                        # A1, A2 bf16, double-buffered
        + 2 * 4 * (2 * tm * LANE + 3 * tk * LANE)    # f32 panels, double-buffered
        + 2 * tm * LANE * 4                          # output, double-buffered
        + tm * LANE * 4                              # accumulator scratch
    )
    vmem_limit = int(min(max(4 * block_bytes, 8 << 20), 32 << 20))

    flops = 2 * n_pad * n_pad * (3 * LANE) + 2 * n_pad * f_in * (5 * LANE)
    bytes_accessed = (2 * n_pad * n_pad * 2            # bf16 adjacencies
                      + 5 * n_pad * LANE * 4           # projection panels
                      + n_pad * LANE * 4)              # output

    out_full = pl.pallas_call(
        _gd_main_kernel,
        out_shape=jax.ShapeDtypeStruct((n_pad, LANE), jnp.float32),
        grid_spec=pltpu.PrefetchScalarGridSpec(
            num_scalar_prefetch=0,
            grid=(n_pad // tm, n_pad // tk),
            in_specs=[
                pl.BlockSpec((tm, tk), lambda i, kk: (i, kk)),    # A1
                pl.BlockSpec((tm, tk), lambda i, kk: (i, kk)),    # A2
                pl.BlockSpec((tm, LANE), lambda i, kk: (i, 0)),   # x @ W0   (row tile)
                pl.BlockSpec((tm, LANE), lambda i, kk: (i, 0)),   # Q*scale  (row tile)
                pl.BlockSpec((tk, LANE), lambda i, kk: (kk, 0)),  # x @ W1   (col tile)
                pl.BlockSpec((tk, LANE), lambda i, kk: (kk, 0)),  # K        (col tile)
                pl.BlockSpec((tk, LANE), lambda i, kk: (kk, 0)),  # V        (col tile)
            ],
            out_specs=pl.BlockSpec((tm, LANE), lambda i, kk: (i, 0)),
            scratch_shapes=[pltpu.VMEM((tm, LANE), jnp.float32)],
        ),
        compiler_params=pltpu.CompilerParams(
            dimension_semantics=("parallel", "arbitrary"),
            vmem_limit_bytes=vmem_limit,
        ),
        cost_estimate=pl.CostEstimate(
            flops=flops, transcendentals=0, bytes_accessed=bytes_accessed),
    )(a1, a2, xw0, q, xw1, kpanel, v)

    return out_full[:n, :f_out]


# ---------------------------------------------------------------------------
# Helpers / reference
# ---------------------------------------------------------------------------
def edge_index_to_dense(edge_index, n):
    """edge_index: [2, E] (src, dst). A[dst, src] += 1 (PyG sum aggregation)."""
    src, dst = edge_index
    a = jnp.zeros((n, n), jnp.float32)
    return a.at[dst, src].add(1.0)


def reference(x, a1, a2, w0, w1, wq, wk, wv):
    ax = a1 @ x
    x1 = x @ w0 + ax @ w1
    q, k, v = x @ wq, x @ wk, x @ wv
    scores = (q @ k.T) / math.sqrt(wq.shape[1])
    x2 = (a2 * scores) @ v
    return x1 - x2


if __name__ == "__main__":
    jax.config.update("jax_default_matmul_precision", "highest")

    N = 256          # number of graph nodes (2x2 grid of 128-tiles)
    F_IN = 8         # in_channels
    F_OUT = 16       # out_channels
    D_ATTN = F_OUT   # attention head dim

    key = jax.random.PRNGKey(0)
    kx, k0, k1, kq, kk_, kv = jax.random.split(key, 6)

    x = jax.random.normal(kx, (N, F_IN), jnp.float32)

    # deterministic parameter init (synthetic, no checkpoint load)
    w0 = jax.random.normal(k0, (F_IN, F_OUT), jnp.float32) * 0.1
    w1 = jax.random.normal(k1, (F_IN, F_OUT), jnp.float32) * 0.1
    wq = jax.random.normal(kq, (F_IN, D_ATTN), jnp.float32) * 0.1
    wk = jax.random.normal(kk_, (F_IN, D_ATTN), jnp.float32) * 0.1
    wv = jax.random.normal(kv, (F_IN, F_OUT), jnp.float32) * 0.1

    # deterministic graphs: ring for edge_index, ring-with-skip for edge_index_2
    idx = jnp.arange(N)
    edge_index = jnp.stack([idx, (idx + 1) % N])                       # src -> dst
    edge_index_2 = jnp.concatenate(
        [jnp.stack([idx, (idx + 1) % N]), jnp.stack([idx, (idx + 2) % N])], axis=1)

    a1 = edge_index_to_dense(edge_index, N)
    a2 = edge_index_to_dense(edge_index_2, N)

    out = gd_block(x, a1, a2, w0, w1, wq, wk, wv)
    jax.block_until_ready(out)

    ref = reference(x, a1, a2, w0, w1, wq, wk, wv)
    assert out.shape == (N, F_OUT)
    assert jnp.allclose(out, ref, atol=2e-3, rtol=2e-3), "mismatch vs reference"

    print("KERNEL_OK")
</pallas_src>

<mosaic_0001>
module attributes {stable_mosaic.version = 11 : i64} {
  func.func @_proj_kernel(%arg0: i32, %arg1: memref<128x8xf32, #tpu.memory_space<vmem>>, %arg2: memref<8x640xf32, #tpu.memory_space<vmem>>, %arg3: memref<128x128xf32, #tpu.memory_space<vmem>>, %arg4: memref<128x128xf32, #tpu.memory_space<vmem>>, %arg5: memref<128x128xf32, #tpu.memory_space<vmem>>, %arg6: memref<128x128xf32, #tpu.memory_space<vmem>>, %arg7: memref<128x128xf32, #tpu.memory_space<vmem>>) attributes {dimension_semantics = [#tpu.dimension_semantics<parallel>], iteration_bounds = array<i64: 2>, scalar_prefetch = 0 : i64, scratch_operands = 0 : i64, tpu.core_type = #tpu.core_type<tc>, window_params = [{transform_indices = @transform_0, window_bounds = array<i64: 128, 8>}, {pipeline_mode = #tpu.pipeline_mode<synchronous>, transform_indices = @transform_1, window_bounds = array<i64: 8, 640>}, {transform_indices = @transform_2, window_bounds = array<i64: 128, 128>}, {transform_indices = @transform_3, window_bounds = array<i64: 128, 128>}, {transform_indices = @transform_4, window_bounds = array<i64: 128, 128>}, {transform_indices = @transform_5, window_bounds = array<i64: 128, 128>}, {transform_indices = @transform_6, window_bounds = array<i64: 128, 128>}]} {
    %c0 = arith.constant 0 : index
    %c0_0 = arith.constant 0 : index
    %0 = vector.load %arg1[%c0, %c0_0] : memref<128x8xf32, #tpu.memory_space<vmem>>, vector<128x8xf32>
    %c0_1 = arith.constant 0 : index
    %c0_2 = arith.constant 0 : index
    %1 = vector.load %arg2[%c0_1, %c0_2] : memref<8x640xf32, #tpu.memory_space<vmem>>, vector<8x640xf32>
    %cst = arith.constant dense<0.000000e+00> : vector<128x640xf32>
    %2 = tpu.matmul %0, %1, %cst {dimension_numbers = #tpu.dot_dimension_numbers<[1], [0], [0], [1], [0, 0, 1, 1], [], []>, precision = #tpu.contract_precision<fp32>} : vector<128x8xf32>, vector<8x640xf32>, vector<128x640xf32> -> vector<128x640xf32>
    %3 = vector.extract_strided_slice %2 {offsets = [0, 0], sizes = [128, 128], strides = [1, 1]} : vector<128x640xf32> to vector<128x128xf32>
    %c0_3 = arith.constant 0 : index
    %c0_4 = arith.constant 0 : index
    %4 = vector.load %arg3[%c0_3, %c0_4] : memref<128x128xf32, #tpu.memory_space<vmem>>, vector<128x128xf32>
    tpu.vector_store %arg3[%c0_3, %c0_4], %3 {strides = array<i32>} : memref<128x128xf32, #tpu.memory_space<vmem>>, vector<128x128xf32>,
    %5 = vector.extract_strided_slice %2 {offsets = [0, 128], sizes = [128, 128], strides = [1, 1]} : vector<128x640xf32> to vector<128x128xf32>
    %c0_5 = arith.constant 0 : index
    %c0_6 = arith.constant 0 : index
    %6 = vector.load %arg4[%c0_5, %c0_6] : memref<128x128xf32, #tpu.memory_space<vmem>>, vector<128x128xf32>
    tpu.vector_store %arg4[%c0_5, %c0_6], %5 {strides = array<i32>} : memref<128x128xf32, #tpu.memory_space<vmem>>, vector<128x128xf32>,
    %7 = vector.extract_strided_slice %2 {offsets = [0, 256], sizes = [128, 128], strides = [1, 1]} : vector<128x640xf32> to vector<128x128xf32>
    %c0_7 = arith.constant 0 : index
    %c0_8 = arith.constant 0 : index
    %8 = vector.load %arg5[%c0_7, %c0_8] : memref<128x128xf32, #tpu.memory_space<vmem>>, vector<128x128xf32>
    tpu.vector_store %arg5[%c0_7, %c0_8], %7 {strides = array<i32>} : memref<128x128xf32, #tpu.memory_space<vmem>>, vector<128x128xf32>,
    %9 = vector.extract_strided_slice %2 {offsets = [0, 384], sizes = [128, 128], strides = [1, 1]} : vector<128x640xf32> to vector<128x128xf32>
    %c0_9 = arith.constant 0 : index
    %c0_10 = arith.constant 0 : index
    %10 = vector.load %arg6[%c0_9, %c0_10] : memref<128x128xf32, #tpu.memory_space<vmem>>, vector<128x128xf32>
    tpu.vector_store %arg6[%c0_9, %c0_10], %9 {strides = array<i32>} : memref<128x128xf32, #tpu.memory_space<vmem>>, vector<128x128xf32>,
    %11 = vector.extract_strided_slice %2 {offsets = [0, 512], sizes = [128, 128], strides = [1, 1]} : vector<128x640xf32> to vector<128x128xf32>
    %c0_11 = arith.constant 0 : index
    %c0_12 = arith.constant 0 : index
    %12 = vector.load %arg7[%c0_11, %c0_12] : memref<128x128xf32, #tpu.memory_space<vmem>>, vector<128x128xf32>
    tpu.vector_store %arg7[%c0_11, %c0_12], %11 {strides = array<i32>} : memref<128x128xf32, #tpu.memory_space<vmem>>, vector<128x128xf32>,
    return
  }
  func.func @transform_0(%arg0: i32) -> (i32, i32) {
    %c0_i32 = arith.constant 0 : i32
    %c0_i32_0 = arith.constant 0 : i32
    return %arg0, %c0_i32 : i32, i32
  }
  func.func @transform_1(%arg0: i32) -> (i32, i32) {
    %c0_i32 = arith.constant 0 : i32
    %c0_i32_0 = arith.constant 0 : i32
    %c0_i32_1 = arith.constant 0 : i32
    return %c0_i32, %c0_i32_0 : i32, i32
  }
  func.func @transform_2(%arg0: i32) -> (i32, i32) {
    %c0_i32 = arith.constant 0 : i32
    %c0_i32_0 = arith.constant 0 : i32
    return %arg0, %c0_i32 : i32, i32
  }
  func.func @transform_3(%arg0: i32) -> (i32, i32) {
    %c0_i32 = arith.constant 0 : i32
    %c0_i32_0 = arith.constant 0 : i32
    return %arg0, %c0_i32 : i32, i32
  }
  func.func @transform_4(%arg0: i32) -> (i32, i32) {
    %c0_i32 = arith.constant 0 : i32
    %c0_i32_0 = arith.constant 0 : i32
    return %arg0, %c0_i32 : i32, i32
  }
  func.func @transform_5(%arg0: i32) -> (i32, i32) {
    %c0_i32 = arith.constant 0 : i32
    %c0_i32_0 = arith.constant 0 : i32
    return %arg0, %c0_i32 : i32, i32
  }
  func.func @transform_6(%arg0: i32) -> (i32, i32) {
    %c0_i32 = arith.constant 0 : i32
    %c0_i32_0 = arith.constant 0 : i32
    return %arg0, %c0_i32 : i32, i32
  }
}

</mosaic_0001>

<bundles_post_ra>
// kernel: tpu_custom_call.1
= control target key start
LH: loop header
LB: loop body
LE: loop exit
PB: predicated region body
PF: predicated region fallthrough
CT: control target
= control target key end

     0   :  { %s5461_s0 = inlined_call_operand.vmem [shape: f32[256,8], index: 0, kind: input, shape index: {}]   ;;  %s5462_s1 = inlined_call_operand.vmem [shape: f32[8,640], index: 1, kind: input, shape index: {}]   ;;  %s5463_s2 = inlined_call_operand.hbm [shape: f32[256,128], index: 2, kind: output, shape index: {0}]   ;;  %s5464_s3 = inlined_call_operand.hbm [shape: f32[256,128], index: 3, kind: output, shape index: {1}]   ;;  %s5465_s4 = inlined_call_operand.hbm [shape: f32[256,128], index: 4, kind: output, shape index: {2}]   ;;  %s5466_s5 = inlined_call_operand.hbm [shape: f32[256,128], index: 5, kind: output, shape index: {3}]   ;;  %s5467_s6 = inlined_call_operand.hbm [shape: f32[256,128], index: 6, kind: output, shape index: {4}]  }
   0x1   :  { %5570 = sst [smem:[#allocation70_spill]] %s5461_s0 }
   0x2   :  { %5571 = sst [smem:[#allocation71_spill]] %s5462_s1 }
   0x3   :  { %5572 = sst [smem:[#allocation72_spill]] %s5464_s3 }
   0x4   :  { %12 = vsyncpa [#allocation3], 0 }
   0x5   :  { %14 = vsyncpa [#allocation3 + $0x1], 0 }
   0x6   :  { %15 = vsyncpa [#allocation5], 0 }
   0x7   :  { %17 = vsyncpa [#allocation5 + $0x1], 0 }
   0x8   :  { %18 = vsyncpa [#allocation8], 0 }
   0x9   :  { %20 = vsyncpa [#allocation8 + $0x1], 0  ;;  %s4106_s21 = smov 0   ;;  %s4108_s22 = smov 0  }
   0xa   :  { %s4110_s23 = smov 0   ;;  %s4112_s24 = smov 0  }
   0xb LB: > { %s4127_s25 = sadd.s32 4294967295, %s4067_s24   ;;  %s5567_s26 = sadd.s32 4294967294, %s4067_s24   ;;  %s4067_s24 = sphi %s4112_s24, %s5776_s24   ;;  %s4063_s23 = sphi %s4110_s23, %s5775_s23   ;;  %s4059_s22 = sphi %s4108_s22, %s5774_s22   ;;  %s4055_s21 = sphi %s4106_s21, %s5773_s21  }
   0xc   : > { %s4131_s27 = sadd.s32 1, %s4067_s24   ;;  %s80_s28 = sadd.s32 1, %s4063_s23 }
   0xd   : > { %s77_s29 = ssub.s32 %s4067_s24, %s4131_s27  ;;  %p90_p0 = scmp.ne.s32.totalorder %s4063_s23, %s4059_s22 }
   0xe   : > { %p78_p1 = scmp.eq.s32.totalorder %s77_s29, 0  ;;  %p91_p2 = scmp.eq.s32.totalorder %s4127_s25, 1 }
   0xf   : > { %p96_p3 = scmp.ne.s32.totalorder %s4059_s22, %s4055_s21  ;;  %p97_p4 = scmp.eq.s32.totalorder %s5567_s26, 1 }
  0x10   : > { %s4144_s30 = scalar_select %p78_p1, %s4063_s23, %s80_s28  }
  0x11   : > { %p4146_p5 = por %p91_p2, %p90_p0  ;;  %p4150_p6 = por %p97_p4, %p96_p3 }
  0x12   : > { %5573 = sst [smem:[#allocation13_spill]] %s4144_s30  ;;  %p3792_p7 = scmp.ge.s32.totalorder %s4067_s24, 1 }
  0x13   : > { %p231_p8 = scmp.lt.s32.totalorder %s4067_s24, 3 }
  0x15   : > { %p232_p9 = pnand %p3792_p7, %p231_p8 }
  0x17   : > { %235 = sbr.rel (%p232_p9) target bundleno = 1180 (0x49c), region = 28 }
  0x1c   : > { %s5576_s1 = sld [smem:[#allocation71_spill]]  ;;  %s3798_s11 = sshll.u32 %s4127_s25, 4  ;;  %vm313_vm0 = vcmask 64512  }
  0x1d   : > { %p282_p10 = scmp.lt.s32.totalorder %s3798_s11, 31  ;;  %s5577_s0 = sld [smem:[#allocation70_spill]] }
  0x1e   : > { %s5568_s20 = sand.u32 1, %s4059_s22   ;;  %s5277_s16 = sshll.u32 %s4127_s25, 7 }
  0x1f   : > { %s5778_s11 = smov (!%p282_p10, %s3798_s11), 31  ;;  %s4550_s28 = sshll.u32 %s5568_s20, 7 }
  0x20   : > { %s3799_s12 = sshll.u32 %s5778_s11, 3  ;;  %s4559_s29 = scalar_lea.vmem [#allocation2], %s4550_s28 }
  0x21   : > { %s4768_s11 = scalar_lea.vmem [#allocation4], %s4550_s28  ;;  %s4931_s14 = scalar_lea.vmem [#allocation6], %s4550_s28 }
  0x22   : > { %v308_v0 = vld [vmem:[%s5576_s1] sm:$0xff]  ;;  %s5767_s3 = sld [smem:[#allocation72_spill]]  ;;  %s5569_s13 = sand.u32 1, %s4127_s25  }
  0x23   : > { %v377_v1 = vand.u32 4294901760, %v308_v0  ;;  %s4163_s15 = scalar_lea.vmem %s5577_s0, %s3799_s12  ;;  %s3547_s26 = sshll.u32 %s4768_s11, 4  ;;  %s3548_s26 = int_to_ptr.vmem [resolvable:$true] %s3547_s26 }
  0x24   : > { %v300_v5 = vld [vmem:[%s4163_s15 + $0x40] sm:$0xff]  ;;  %v301_v7 = vld [vmem:[%s4163_s15 + $0x48] sm:$0xff]  ;;  %v302_v12 = vld [vmem:[%s4163_s15 + $0x50] sm:$0xff]  ;;  %s5300_s9 = scalar_lea.sflag [#allocation5], %s5569_s13 }
  0x25   : > { %3822 = vmatpush.msra.mxu2 %v377_v1  ;;  %v524_v2 = vsub.f32 %v308_v0, %v377_v1  ;;  %378 = vmatpush.msra.mxu0 %v377_v1  ;;  %v292_v6 = vld [vmem:[%s4163_s15] sm:$0xff]  ;;  %v339_v8 = vsel %vm313_vm0, %v300_v5, 0  ;;  %v342_v10 = vsel %vm313_vm0, %v301_v7, 0  ;;  %v293_v11 = vld [vmem:[%s4163_s15 + $0x8] sm:$0xff]  ;;  %v294_v13 = vld [vmem:[%s4163_s15 + $0x10] sm:$0xff]  ;;  %v345_v19 = vsel %vm313_vm0, %v302_v12, 0 }
  0x26   : > { %v315_v9 = vsel %vm313_vm0, %v292_v6, 0  ;;  %v4174_v15 = vand.u32 4294901760, %v339_v8  ;;  %v4178_v17 = vand.u32 4294901760, %v342_v10  ;;  %v318_v18 = vsel %vm313_vm0, %v293_v11, 0  ;;  %v303_v34 = vld [vmem:[%s4163_s15 + $0x58] sm:$0xff]  ;;  %v304_v50 = vld [vmem:[%s4163_s15 + $0x60] sm:$0xff] }
  0x27   : > { %v525_v3 = vand.u32 4294901760, %v524_v2  ;;  %611 = vmatpush.msrb.mxu2 %v524_v2  ;;  %v4176_v16 = vand.u32 4294901760, %v315_v9  ;;  %v321_v20 = vsel %vm313_vm0, %v294_v13, 0  ;;  %v4192_v24 = vand.u32 4294901760, %v318_v18  ;;  %v295_v35 = vld [vmem:[%s4163_s15 + $0x18] sm:$0xff]  ;;  %v296_v51 = vld [vmem:[%s4163_s15 + $0x20] sm:$0xff] }
  0x28   : > { %5578 = vst [vmem:[#allocation14_spill] sm:$0xff] %v4174_v15  ;;  %v4184_v21 = vsub.f32 %v339_v8, %v4174_v15  ;;  %v4190_v23 = vsub.f32 %v342_v10, %v4178_v17  ;;  %v4205_v28 = vand.u32 4294901760, %v345_v19  ;;  %v4207_v29 = vand.u32 4294901760, %v321_v20  ;;  %v305_v0 = vld [vmem:[%s4163_s15 + $0x68] sm:$0xff]  ;;  %s3546_s19 = scalar_lea.hbm %s5767_s3, %s5277_s16  ;;  %s3905_s0 = scalar_lea.hbm %s5767_s3, 256 }
  0x29   : > { %v526_v4 = vsub.f32 %v524_v2, %v525_v3  ;;  %825 = vmatpush.msrb.mxu0 %v525_v3  ;;  %v4187_v22 = vsub.f32 %v315_v9, %v4176_v16  ;;  %v4203_v27 = vsub.f32 %v318_v18, %v4192_v24  ;;  %v348_v39 = vsel %vm313_vm0, %v303_v34, 0  ;;  %v298_v18 = vld [vmem:[%s4163_s15 + $0x30] sm:$0xff]  ;;  %s3549_s17 = sshll.u32 %s3546_s19, 4  ;;  %s3550_s17 = int_to_ptr.hbm [resolvable:$true] %s3549_s17 }
  0x2a   : > { %5579 = vst [vmem:[#allocation15_spill] sm:$0xff] %v4184_v21  ;;  %v4197_v25 = vand.u32 4294901760, %v4184_v21  ;;  %v4214_v32 = vand.u32 4294901760, %v4190_v23  ;;  %v4226_v38 = vsub.f32 %v345_v19, %v4205_v28  ;;  %v4236_v42 = vsub.f32 %v321_v20, %v4207_v29  ;;  %s3899_s10 = sshra.s32 %s3550_s17, 4  ;;  %s3900_s10 = int_to_ptr.hbm [resolvable:$true] %s3899_s10 }
  0x2b   : > { %v527_v14 = vand.u32 4294901760, %v526_v4  ;;  %5580 = vst [vmem:[#allocation16_spill] sm:$0xff] %v4187_v22  ;;  %v4200_v26 = vand.u32 4294901760, %v4187_v22  ;;  %v4217_v33 = vand.u32 4294901760, %v4203_v27  ;;  %v324_v43 = vsel %vm313_vm0, %v295_v35, 0  ;;  %p3906_p0 = scmp.lt.s32.totalorder %s3900_s10, %s5767_s3 }
  0x2c   : > { %5581 = vst [vmem:[#allocation17_spill] sm:$0xff] %v4190_v23  ;;  %v446_v30 = vsub.f32 %v4184_v21, %v4197_v25  ;;  %v454_v40 = vsub.f32 %v4190_v23, %v4214_v32  ;;  %v4241_v44 = vand.u32 4294901760, %v348_v39  ;;  %v4243_v45 = vand.u32 4294901760, %v324_v43 }
  0x2d   : > { %3823 = vmatpush.msra.mxu3 %v527_v14  ;;  %528 = vmatpush.msra.mxu1 %v527_v14  ;;  %5582 = vst [vmem:[#allocation18_spill] sm:$0xff] %v4197_v25  ;;  %v382_v31 = vsub.f32 %v4187_v22, %v4200_v26  ;;  %v390_v41 = vsub.f32 %v4203_v27, %v4217_v33  ;;  %v4250_v48 = vand.u32 4294901760, %v4226_v38  ;;  %v4253_v49 = vand.u32 4294901760, %v4236_v42  ;;  %v306_v14 = vld [vmem:[%s4163_s15 + $0x70] sm:$0xff] }
  0x2e   : > { %562 = vmatmul.f32.vlgmr.msra.gmra.mxu3 %v4174_v15  ;;  %530 = vmatmul.f32.vlgmr.msra.gmra.mxu1 %v4176_v16  ;;  %5583 = vst [vmem:[#allocation19_spill] sm:$0xff] %v4200_v26  ;;  %v4221_v36 = vand.u32 4294901760, %v446_v30  ;;  %v4245_v46 = vand.u32 4294901760, %v454_v40  ;;  %v4258_v52 = vsub.f32 %v348_v39, %v4241_v44  ;;  %v4261_v53 = vsub.f32 %v324_v43, %v4243_v45 }
  0x2f   : > { %709 = vmatpush.msrb.mxu3 %v377_v1  ;;  %907 = vmatpush.msrb.mxu1 %v377_v1  ;;  %5584 = vst [vmem:[#allocation20_spill] sm:$0xff] %v4205_v28  ;;  %v4223_v37 = vand.u32 4294901760, %v382_v31  ;;  %v4247_v47 = vand.u32 4294901760, %v390_v41  ;;  %v462_v54 = vsub.f32 %v4226_v38, %v4250_v48  ;;  %v398_v55 = vsub.f32 %v4236_v42, %v4253_v49  ;;  %v297_v1 = vld [vmem:[%s4163_s15 + $0x28] sm:$0xff] }
  0x30   : > { %5585 = vst [vmem:[#allocation21_spill] sm:$0xff] %v4214_v32  ;;  %448 = vmatmul.f32.vlgmr.msra.gmra.mxu2 %v4221_v36  ;;  %v351_v56 = vsel %vm313_vm0, %v304_v50, 0  ;;  %v327_v57 = vsel %vm313_vm0, %v296_v51, 0  ;;  %v4274_v58 = vand.u32 4294901760, %v4258_v52  ;;  %v4277_v59 = vand.u32 4294901760, %v4261_v53 }
  0x31   : > { %5586 = vst [vmem:[#allocation22_spill] sm:$0xff] %v4221_v36  ;;  %384 = vmatmul.f32.vlgmr.msra.gmra.mxu0 %v4223_v37  ;;  %v4279_v60 = vand.u32 4294901760, %v462_v54  ;;  %v4281_v61 = vand.u32 4294901760, %v398_v55  ;;  %v4283_v62 = vand.u32 4294901760, %v351_v56  ;;  %v4285_v63 = vand.u32 4294901760, %v327_v57  ;;  %v307_v54 = vld [vmem:[%s4163_s15 + $0x78] sm:$0xff] }
  0x32   : > { %5587 = vst [vmem:[#allocation23_spill] sm:$0xff] %v4223_v37  ;;  %v470_v2 = vsub.f32 %v4258_v52, %v4274_v58  ;;  %v406_v3 = vsub.f32 %v4261_v53, %v4277_v59  ;;  %v354_v6 = vsel %vm313_vm0, %v305_v0, 0  ;;  %v330_v7 = vsel %vm313_vm0, %v297_v1, 0  ;;  %v299_v55 = vld [vmem:[%s4163_s15 + $0x38] sm:$0xff]  ;;  %s5145_s15 = scalar_lea.vmem [#allocation7], %s4550_s28 }
  0x33   : > { %5588 = vst [vmem:[#allocation24_spill] sm:$0xff] %v4226_v38  ;;  %v4296_v4 = vsub.f32 %v351_v56, %v4283_v62  ;;  %v4299_v5 = vsub.f32 %v327_v57, %v4285_v63  ;;  %v4307_v9 = vand.u32 4294901760, %v354_v6  ;;  %v4317_v13 = vand.u32 4294901760, %v330_v7  ;;  %s3581_s18 = sshll.u32 %s5145_s15, 4  ;;  %s3582_s18 = int_to_ptr.vmem [resolvable:$true] %s3581_s18 }
  0x34   : > { %5589 = vst [vmem:[#allocation25_spill] sm:$0xff] %v4241_v44  ;;  %v4305_v8 = vand.u32 4294901760, %v470_v2  ;;  %v4309_v10 = vand.u32 4294901760, %v406_v3  ;;  %v357_v34 = vsel %vm313_vm0, %v306_v14, 0  ;;  %v333_v35 = vsel %vm313_vm0, %v298_v18, 0  ;;  %v309_v2 = vld [vmem:[%s5576_s1 + $0x8] sm:$0xff] }
  0x35   : > { %5590 = vst [vmem:[#allocation26_spill] sm:$0xff] %v4245_v46  ;;  %v4312_v11 = vand.u32 4294901760, %v4296_v4  ;;  %v4315_v12 = vand.u32 4294901760, %v4299_v5  ;;  %v4322_v19 = vsub.f32 %v354_v6, %v4307_v9  ;;  %v4331_v31 = vsub.f32 %v330_v7, %v4317_v13 }
  0x36   : > { %566 = vmatmul.f32.gmra.mxu3 %v4178_v17  ;;  %534 = vmatmul.f32.gmra.mxu1 %v4192_v24  ;;  %5591 = vst [vmem:[#allocation27_spill] sm:$0xff] %v4247_v47  ;;  %v4340_v40 = vand.u32 4294901760, %v357_v34  ;;  %v4349_v51 = vand.u32 4294901760, %v333_v35  ;;  %v360_v3 = vsel %vm313_vm0, %v307_v54, 0  ;;  %v336_v6 = vsel %vm313_vm0, %v299_v55, 0 }
  0x37   : > { %5592 = vst [vmem:[#allocation28_spill] sm:$0xff] %v4250_v48  ;;  %v478_v20 = vsub.f32 %v4296_v4, %v4312_v11  ;;  %v414_v30 = vsub.f32 %v4299_v5, %v4315_v12  ;;  %v4338_v39 = vand.u32 4294901760, %v4322_v19  ;;  %v4347_v50 = vand.u32 4294901760, %v4331_v31 }
  0x38   : > { %5593 = vst [vmem:[#allocation29_spill] sm:$0xff] %v4258_v52  ;;  %456 = vmatmul.f32.gmra.mxu2 %v4245_v46  ;;  %v4356_v57 = vsub.f32 %v357_v34, %v4340_v40  ;;  %v4363_v1 = vsub.f32 %v333_v35, %v4349_v51  ;;  %v988_v7 = vand.u32 4294901760, %v309_v2  ;;  %v4382_v35 = vand.u32 4294901760, %v360_v3 }
  0x39   : > { %392 = vmatmul.f32.gmra.mxu0 %v4247_v47  ;;  %5594 = vst [vmem:[#allocation30_spill] sm:$0xff] %v4274_v58  ;;  %v4342_v41 = vand.u32 4294901760, %v478_v20  ;;  %v4344_v43 = vand.u32 4294901760, %v414_v30  ;;  %v486_v56 = vsub.f32 %v4322_v19, %v4338_v39  ;;  %v422_v0 = vsub.f32 %v4331_v31, %v4347_v50 }
  0x3a   : > { %5595 = vst [vmem:[#allocation31_spill] sm:$0xff] %v4279_v60  ;;  %v4375_v18 = vand.u32 4294901760, %v4356_v57  ;;  %989 = vmatpush.msra.mxu2 %v988_v7  ;;  %v1135_v20 = vsub.f32 %v309_v2, %v988_v7  ;;  %1320 = vmatpush.msra.mxu1 %v988_v7  ;;  %v4380_v34 = vand.u32 4294901760, %v4363_v1  ;;  %v4393_v2 = vsub.f32 %v360_v3, %v4382_v35 }
  0x3b   : > { %5596 = vst [vmem:[#allocation32_spill] sm:$0xff] %v4281_v61  ;;  %v4372_v14 = vand.u32 4294901760, %v486_v56  ;;  %v4377_v30 = vand.u32 4294901760, %v422_v0 }
  0x3c   : > { %5597 = vst [vmem:[#allocation33_spill] sm:$0xff] %v4283_v62  ;;  %v1136_v54 = vand.u32 4294901760, %v1135_v20  ;;  %1222 = vmatpush.msra.mxu0 %v1135_v20  ;;  %v494_v55 = vsub.f32 %v4356_v57, %v4375_v18  ;;  %v430_v0 = vsub.f32 %v4363_v1, %v4380_v34  ;;  %v4405_v46 = vand.u32 4294901760, %v4393_v2 }
  0x3d   : > { %5598 = vst [vmem:[#allocation34_spill] sm:$0xff] %v4296_v4 }
  0x3e   : > { %570 = vmatmul.f32.gmra.mxu3 %v4205_v28  ;;  %538 = vmatmul.f32.gmra.mxu1 %v4207_v29  ;;  %5599 = vst [vmem:[#allocation35_spill] sm:$0xff] %v4305_v8  ;;  %v1137_v56 = vsub.f32 %v1135_v20, %v1136_v54  ;;  %v4400_v20 = vand.u32 4294901760, %v494_v55  ;;  %v502_v3 = vsub.f32 %v4393_v2, %v4405_v46 }
  0x3f   : > { %5600 = vst [vmem:[#allocation36_spill] sm:$0xff] %v4307_v9 }
  0x40   : > { %464 = vmatmul.f32.gmra.mxu2 %v4279_v60  ;;  %5601 = vst [vmem:[#allocation37_spill] sm:$0xff] %v4309_v10  ;;  %v1138_v60 = vand.u32 4294901760, %v1137_v56 }
  0x41   : > { %400 = vmatmul.f32.gmra.mxu0 %v4281_v61  ;;  %5602 = vst [vmem:[#allocation38_spill] sm:$0xff] %v4312_v11 }
  0x42   : > { %5603 = vst [vmem:[#allocation39_spill] sm:$0xff] %v4322_v19  ;;  %1139 = vmatpush.msra.mxu3 %v1138_v60 }
  0x43   : > { %5604 = vst [vmem:[#allocation40_spill] sm:$0xff] %v4338_v39 }
  0x44   : > { %5605 = vst [vmem:[#allocation41_spill] sm:$0xff] %v4342_v41 }
  0x45   : > { %5606 = vst [vmem:[#allocation42_spill] sm:$0xff] %v4344_v43 }
  0x46   : > { %574 = vmatmul.f32.gmra.mxu3 %v4241_v44  ;;  %542 = vmatmul.f32.gmra.mxu1 %v4243_v45  ;;  %5607 = vst [vmem:[#allocation43_spill] sm:$0xff] %v4356_v57 }
  0x47   : > { %5608 = vst [vmem:[#allocation44_spill] sm:$0xff] %v4372_v14 }
  0x48   : > { %472 = vmatmul.f32.gmra.mxu2 %v4305_v8  ;;  %5609 = vst [vmem:[#allocation45_spill] sm:$0xff] %v4375_v18 }
  0x49   : > { %408 = vmatmul.f32.gmra.mxu0 %v4309_v10  ;;  %5610 = vst [vmem:[#allocation46_spill] sm:$0xff] %v4377_v30 }
  0x4a   : > { %5611 = vst [vmem:[#allocation47_spill] sm:$0xff] %v4393_v2 }
  0x4b   : > { %5613 = vst [vmem:[#allocation49_spill] sm:$0xff] %v4400_v20 }
  0x4c   : > { %5615 = vst [vmem:[#allocation51_spill] sm:$0xff] %v4405_v46 }
  0x4e   : > { %578 = vmatmul.f32.gmra.mxu3 %v4283_v62  ;;  %546 = vmatmul.f32.gmra.mxu1 %v4285_v63 }
  0x50   : > { %480 = vmatmul.f32.gmra.mxu2 %v4342_v41  ;;  %v4384_v41 = vand.u32 4294901760, %v336_v6 }
  0x51   : > { %416 = vmatmul.f32.gmra.mxu0 %v4344_v43 }
  0x52   : > { %v4396_v8 = vsub.f32 %v336_v6, %v4384_v41  ;;  %v4418_v6 = vand.u32 4294901760, %v502_v3 }
  0x54   : > { %5612 = vst [vmem:[#allocation48_spill] sm:$0xff] %v4396_v8  ;;  %v4408_v36 = vand.u32 4294901760, %v4396_v8 }
  0x55   : > { %5617 = vst [vmem:[#allocation53_spill] sm:$0xff] %v4418_v6 }
  0x56   : > { %582 = vmatmul.f32.gmra.mxu3 %v4307_v9  ;;  %550 = vmatmul.f32.gmra.mxu1 %v4317_v13  ;;  %5616 = vst [vmem:[#allocation52_spill] sm:$0xff] %v4408_v36  ;;  %v438_v60 = vsub.f32 %v4396_v8, %v4408_v36 }
  0x58   : > { %488 = vmatmul.f32.gmra.mxu2 %v4372_v14  ;;  %v4402_v14 = vand.u32 4294901760, %v430_v0  ;;  %v4420_v55 = vand.u32 4294901760, %v438_v60 }
  0x59   : > { %424 = vmatmul.f32.gmra.mxu0 %v4377_v30 }
  0x5a   : > { %5614 = vst [vmem:[#allocation50_spill] sm:$0xff] %v4402_v14 }
  0x5b   : > { %5618 = vst [vmem:[#allocation54_spill] sm:$0xff] %v4420_v55 }
  0x5e   : > { %586 = vmatmul.f32.gmra.mxu3 %v4340_v40  ;;  %554 = vmatmul.f32.gmra.mxu1 %v4349_v51 }
  0x60   : > { %496 = vmatmul.f32.gmra.mxu2 %v4400_v20 }
  0x61   : > { %432 = vmatmul.f32.gmra.mxu0 %v4402_v14 }
  0x66   : > { %590 = vmatmul.f32.gmra.mxu3 %v4382_v35  ;;  %558 = vmatmul.f32.gmra.mxu1 %v4384_v41 }
  0x68   : > { %504 = vmatmul.f32.gmra.mxu2 %v4418_v6 }
  0x69   : > { %440 = vmatmul.f32.gmra.mxu0 %v4420_v55 }
  0x6e   : > { %713 = vmatmul.f32.vlgmr.msrb.gmra.mxu3 %v4200_v26  ;;  %909 = vmatmul.f32.vlgmr.msrb.gmra.mxu1 %v4176_v16 }
  0x6f   : > { %1518 = vmatpush.msrb.mxu3 %v988_v7 }
  0x70   : > { %614 = vmatmul.f32.vlgmr.msrb.gmra.mxu2 %v4187_v22 }
  0x71   : > { %827 = vmatmul.f32.vlgmr.msrb.gmra.mxu0 %v4176_v16  ;;  %1436 = vmatpush.msrb.mxu2 %v1136_v54 }
  0x76   : > { %719 = vmatmul.f32.gmra.mxu3 %v4217_v33  ;;  %913 = vmatmul.f32.gmra.mxu1 %v4192_v24 }
  0x78   : > { %619 = vmatmul.f32.gmra.mxu2 %v4203_v27 }
  0x79   : > { %831 = vmatmul.f32.gmra.mxu0 %v4192_v24 }
  0x7e   : > { %725 = vmatmul.f32.gmra.mxu3 %v4253_v49  ;;  %917 = vmatmul.f32.gmra.mxu1 %v4207_v29 }
  0x80   : > { %624 = vmatmul.f32.gmra.mxu2 %v4236_v42 }
  0x81   : > { %835 = vmatmul.f32.gmra.mxu0 %v4207_v29 }
  0x86   : > { %731 = vmatmul.f32.gmra.mxu3 %v4277_v59  ;;  %921 = vmatmul.f32.gmra.mxu1 %v4243_v45 }
  0x88   : > { %629 = vmatmul.f32.gmra.mxu2 %v4261_v53 }
  0x89   : > { %839 = vmatmul.f32.gmra.mxu0 %v4243_v45 }
  0x8e   : > { %737 = vmatmul.f32.gmra.mxu3 %v4315_v12  ;;  %925 = vmatmul.f32.gmra.mxu1 %v4285_v63 }
  0x90   : > { %634 = vmatmul.f32.gmra.mxu2 %v4299_v5 }
  0x91   : > { %843 = vmatmul.f32.gmra.mxu0 %v4285_v63 }
  0x96   : > { %743 = vmatmul.f32.gmra.mxu3 %v4347_v50  ;;  %929 = vmatmul.f32.gmra.mxu1 %v4317_v13 }
  0x98   : > { %639 = vmatmul.f32.gmra.mxu2 %v4331_v31 }
  0x99   : > { %847 = vmatmul.f32.gmra.mxu0 %v4317_v13 }
  0x9e   : > { %749 = vmatmul.f32.gmra.mxu3 %v4380_v34  ;;  %933 = vmatmul.f32.gmra.mxu1 %v4349_v51 }
  0xa0   : > { %644 = vmatmul.f32.gmra.mxu2 %v4363_v1 }
  0xa1   : > { %851 = vmatmul.f32.gmra.mxu0 %v4349_v51 }
  0xa6   : > { %755 = vmatmul.f32.gmra.mxu3 %v4408_v36  ;;  %937 = vmatmul.f32.gmra.mxu1 %v4384_v41 }
  0xa8   : > { %649 = vmatmul.f32.gmra.mxu2 %v4396_v8 }
  0xa9   : > { %855 = vmatmul.f32.gmra.mxu0 %v4384_v41 }
  0xab   : > { %v4454_v7 = vpop.f32.mrf.mxu1 }
  0xae   : > { %761 = vmatmul.f32.gmra.mxu3 %v4197_v25  ;;  %941 = vmatmul.f32.gmra.mxu1 %v4174_v15  ;;  %v4460_v56 = vpop.f32.mrf.mxu0 }
  0xb0   : > { %654 = vmatmul.f32.gmra.mxu2 %v4184_v21 }
  0xb1   : > { %v563_v54 = vpop.f32.mrf.mxu3  ;;  %859 = vmatmul.f32.gmra.mxu0 %v4174_v15 }
  0xb3   : > { %v4462_v0 = vpop.f32.mrf.mxu1  ;;  %v449_v3 = vpop.f32.mrf.mxu2 }
  0xb4   : > { %v4468_v60 = vadd.f32 %v563_v54, %v449_v3 }
  0xb6   : > { %767 = vmatmul.f32.gmra.mxu3 %v4214_v32  ;;  %945 = vmatmul.f32.gmra.mxu1 %v4178_v17  ;;  %5619 = vst [vmem:[#allocation55_spill] sm:$0xff] %v4468_v60  ;;  %v4470_v20 = vpop.f32.mrf.mxu0 }
  0xb8   : > { %659 = vmatmul.f32.gmra.mxu2 %v4190_v23 }
  0xb9   : > { %v567_v6 = vpop.f32.mrf.mxu3  ;;  %863 = vmatmul.f32.gmra.mxu0 %v4178_v17 }
  0xbb   : > { %v4472_v25 = vpop.f32.mrf.mxu1  ;;  %v457_v21 = vpop.f32.mrf.mxu2 }
  0xbc   : > { %v4478_v32 = vadd.f32 %v567_v6, %v457_v21 }
  0xbe   : > { %773 = vmatmul.f32.gmra.mxu3 %v4250_v48  ;;  %949 = vmatmul.f32.gmra.mxu1 %v4205_v28  ;;  %5620 = vst [vmem:[#allocation56_spill] sm:$0xff] %v4478_v32  ;;  %v4480_v8 = vpop.f32.mrf.mxu0 }
  0xc0   : > { %664 = vmatmul.f32.gmra.mxu2 %v4226_v38 }
  0xc1   : > { %v571_v15 = vpop.f32.mrf.mxu3  ;;  %867 = vmatmul.f32.gmra.mxu0 %v4205_v28 }
  0xc3   : > { %v4482_v54 = vpop.f32.mrf.mxu1  ;;  %v465_v3 = vpop.f32.mrf.mxu2 }
  0xc4   : > { %v4488_v48 = vadd.f32 %v571_v15, %v465_v3 }
  0xc6   : > { %779 = vmatmul.f32.gmra.mxu3 %v4274_v58  ;;  %953 = vmatmul.f32.gmra.mxu1 %v4241_v44  ;;  %5621 = vst [vmem:[#allocation57_spill] sm:$0xff] %v4488_v48  ;;  %v4490_v60 = vpop.f32.mrf.mxu0 }
  0xc8   : > { %669 = vmatmul.f32.gmra.mxu2 %v4258_v52 }
  0xc9   : > { %v575_v23 = vpop.f32.mrf.mxu3  ;;  %871 = vmatmul.f32.gmra.mxu0 %v4241_v44 }
  0xcb   : > { %v4492_v21 = vpop.f32.mrf.mxu1  ;;  %v473_v6 = vpop.f32.mrf.mxu2 }
  0xcc   : > { %v4498_v58 = vadd.f32 %v575_v23, %v473_v6 }
  0xce   : > { %785 = vmatmul.f32.gmra.mxu3 %v4312_v11  ;;  %957 = vmatmul.f32.gmra.mxu1 %v4283_v62  ;;  %5622 = vst [vmem:[#allocation58_spill] sm:$0xff] %v4498_v58  ;;  %v4500_v32 = vpop.f32.mrf.mxu0 }
  0xd0   : > { %674 = vmatmul.f32.gmra.mxu2 %v4296_v4 }
  0xd1   : > { %v579_v38 = vpop.f32.mrf.mxu3  ;;  %875 = vmatmul.f32.gmra.mxu0 %v4283_v62 }
  0xd3   : > { %v4502_v15 = vpop.f32.mrf.mxu1  ;;  %v481_v3 = vpop.f32.mrf.mxu2 }
  0xd4   : > { %v4508_v11 = vadd.f32 %v579_v38, %v481_v3  ;;  %v310_v38 = vld [vmem:[%s5576_s1 + $0x10] sm:$0xff] }
  0xd6   : > { %791 = vmatmul.f32.gmra.mxu3 %v4338_v39  ;;  %961 = vmatmul.f32.gmra.mxu1 %v4307_v9  ;;  %5623 = vst [vmem:[#allocation59_spill] sm:$0xff] %v4508_v11  ;;  %v4510_v48 = vpop.f32.mrf.mxu0  ;;  %v1599_v11 = vand.u32 4294901760, %v310_v38 }
  0xd8   : > { %679 = vmatmul.f32.gmra.mxu2 %v4322_v19  ;;  %1600 = vmatpush.msrb.mxu0 %v1599_v11  ;;  %v1746_v19 = vsub.f32 %v310_v38, %v1599_v11 }
  0xd9   : > { %v583_v52 = vpop.f32.mrf.mxu3  ;;  %879 = vmatmul.f32.gmra.mxu0 %v4307_v9 }
  0xdb   : > { %v4512_v23 = vpop.f32.mrf.mxu1  ;;  %v489_v6 = vpop.f32.mrf.mxu2 }
  0xdc   : > { %v4518_v39 = vadd.f32 %v583_v52, %v489_v6  ;;  %v1747_v52 = vand.u32 4294901760, %v1746_v19 }
  0xde   : > { %797 = vmatmul.f32.gmra.mxu3 %v4375_v18  ;;  %965 = vmatmul.f32.gmra.mxu1 %v4340_v40  ;;  %5624 = vst [vmem:[#allocation60_spill] sm:$0xff] %v4518_v39  ;;  %v4523_v3 = vpop.f32.mrf.mxu0  ;;  %v1748_v39 = vsub.f32 %v1746_v19, %v1747_v52 }
  0xe0   : > { %684 = vmatmul.f32.gmra.mxu2 %v4356_v57  ;;  %v1749_v44 = vand.u32 4294901760, %v1748_v39 }
  0xe1   : > { %v587_v4 = vpop.f32.mrf.mxu3  ;;  %883 = vmatmul.f32.gmra.mxu0 %v4340_v40 }
  0xe2   : > { %1750 = vmatpush.msrb.mxu1 %v1749_v44  ;;  %v532_v44 = vadd.f32 %v4454_v7, %v4460_v56 }
  0xe3   : > { %v4525_v58 = vpop.f32.mrf.mxu1  ;;  %v497_v6 = vpop.f32.mrf.mxu2 }
  0xe4   : > { %v4531_v18 = vadd.f32 %v587_v4, %v497_v6 }
  0xe6   : > { %803 = vmatmul.f32.gmra.mxu3 %v4405_v46  ;;  %969 = vmatmul.f32.gmra.mxu1 %v4382_v35  ;;  %5625 = vst [vmem:[#allocation61_spill] sm:$0xff] %v4531_v18  ;;  %v4533_v62 = vpop.f32.mrf.mxu0 }
  0xe8   : > { %689 = vmatmul.f32.gmra.mxu2 %v4393_v2 }
  0xe9   : > { %v591_v9 = vpop.f32.mrf.mxu3  ;;  %887 = vmatmul.f32.gmra.mxu0 %v4382_v35 }
  0xeb   : > { %v910_v28 = vpop.f32.mrf.mxu1  ;;  %v505_v38 = vpop.f32.mrf.mxu2 }
  0xec   : > { %v4539_v4 = vadd.f32 %v591_v9, %v505_v38 }
  0xee   : > { %1141 = vmatmul.f32.vlgmr.msra.gmra.mxu3 %v4176_v16  ;;  %1324 = vmatmul.f32.vlgmr.msra.gmra.mxu1 %v4200_v26  ;;  %5626 = vst [vmem:[#allocation62_spill] sm:$0xff] %v4539_v4  ;;  %v828_v18 = vpop.f32.mrf.mxu0 }
  0xef   : > { %1931 = vmatpush.msra.mxu3 %v1599_v11  ;;  %2129 = vmatpush.msra.mxu1 %v1599_v11 }
  0xf0   : > { %995 = vmatmul.f32.vlgmr.msra.gmra.mxu2 %v4223_v37 }
  0xf1   : > { %v714_v6 = vpop.f32.mrf.mxu3  ;;  %1225 = vmatmul.f32.vlgmr.msra.gmra.mxu0 %v4187_v22  ;;  %1833 = vmatpush.msra.mxu2 %v1746_v19  ;;  %v536_v19 = vadd.f32 %v4462_v0, %v4470_v20 }
  0xf2   : > { %2047 = vmatpush.msra.mxu0 %v1747_v52 }
  0xf3   : > { %v914_v39 = vpop.f32.mrf.mxu1  ;;  %v615_v11 = vpop.f32.mrf.mxu2 }
  0xf4   : > { %v616_v9 = vadd.f32 %v615_v11, %v532_v44 }
  0xf6   : > { %1145 = vmatmul.f32.gmra.mxu3 %v4192_v24  ;;  %1330 = vmatmul.f32.gmra.mxu1 %v4217_v33  ;;  %v832_v26 = vpop.f32.mrf.mxu0  ;;  %v715_v4 = vadd.f32 %v714_v6, %v616_v9 }
  0xf8   : > { %v829_v37 = vadd.f32 %v828_v18, %v715_v4  ;;  %1003 = vmatmul.f32.gmra.mxu2 %v4247_v47 }
  0xf9   : > { %v720_v38 = vpop.f32.mrf.mxu3  ;;  %1230 = vmatmul.f32.gmra.mxu0 %v4203_v27 }
  0xfa   : > { %v911_v7 = vadd.f32 %v910_v28, %v829_v37  ;;  %v540_v28 = vadd.f32 %v4472_v25, %v4480_v8  ;;  %v544_v25 = vadd.f32 %v4482_v54, %v4490_v60 }
  0xfb   : > { %v918_v22 = vpop.f32.mrf.mxu1  ;;  %v620_v56 = vpop.f32.mrf.mxu2 }
  0xfc   : > { %3417 = vst [vmem:[%s4559_s29] sm:$0xff] %v911_v7  ;;  %v621_v52 = vadd.f32 %v620_v56, %v536_v19 }
  0xfe   : > { %1149 = vmatmul.f32.gmra.mxu3 %v4207_v29  ;;  %1336 = vmatmul.f32.gmra.mxu1 %v4253_v49  ;;  %v836_v4 = vpop.f32.mrf.mxu0  ;;  %v721_v6 = vadd.f32 %v720_v38, %v621_v52 }
 0x100   : > { %v833_v11 = vadd.f32 %v832_v26, %v721_v6  ;;  %1011 = vmatmul.f32.gmra.mxu2 %v4281_v61 }
 0x101   : > { %v726_v18 = vpop.f32.mrf.mxu3  ;;  %1235 = vmatmul.f32.gmra.mxu0 %v4236_v42 }
 0x102   : > { %v915_v37 = vadd.f32 %v914_v39, %v833_v11 }
 0x103   : > { %v922_v44 = vpop.f32.mrf.mxu1  ;;  %v625_v20 = vpop.f32.mrf.mxu2 }
 0x104   : > { %3418 = vst [vmem:[%s4559_s29 + $0x8] sm:$0xff] %v915_v37  ;;  %v626_v0 = vadd.f32 %v625_v20, %v540_v28 }
 0x106   : > { %1153 = vmatmul.f32.gmra.mxu3 %v4243_v45  ;;  %1342 = vmatmul.f32.gmra.mxu1 %v4277_v59  ;;  %v840_v38 = vpop.f32.mrf.mxu0  ;;  %v727_v19 = vadd.f32 %v726_v18, %v626_v0 }
 0x108   : > { %v837_v7 = vadd.f32 %v836_v4, %v727_v19  ;;  %1019 = vmatmul.f32.gmra.mxu2 %v4309_v10 }
 0x109   : > { %v732_v9 = vpop.f32.mrf.mxu3  ;;  %1240 = vmatmul.f32.gmra.mxu0 %v4261_v53 }
 0x10a   : > { %v919_v8 = vadd.f32 %v918_v22, %v837_v7  ;;  %v548_v22 = vadd.f32 %v4492_v21, %v4500_v32  ;;  %v552_v32 = vadd.f32 %v4502_v15, %v4510_v48  ;;  %v556_v48 = vadd.f32 %v4512_v23, %v4523_v3 }
 0x10b   : > { %v926_v26 = vpop.f32.mrf.mxu1  ;;  %v630_v39 = vpop.f32.mrf.mxu2  ;;  %v560_v23 = vadd.f32 %v4525_v58, %v4533_v62 }
 0x10c   : > { %3419 = vst [vmem:[%s4559_s29 + $0x10] sm:$0xff] %v919_v8  ;;  %v631_v56 = vadd.f32 %v630_v39, %v544_v25 }
 0x10e   : > { %1157 = vmatmul.f32.gmra.mxu3 %v4285_v63  ;;  %1348 = vmatmul.f32.gmra.mxu1 %v4315_v12  ;;  %v844_v18 = vpop.f32.mrf.mxu0  ;;  %v733_v6 = vadd.f32 %v732_v9, %v631_v56 }
 0x110   : > { %v841_v11 = vadd.f32 %v840_v38, %v733_v6  ;;  %1027 = vmatmul.f32.gmra.mxu2 %v4344_v43 }
 0x111   : > { %v738_v52 = vpop.f32.mrf.mxu3  ;;  %1245 = vmatmul.f32.gmra.mxu0 %v4299_v5 }
 0x112   : > { %v923_v60 = vadd.f32 %v922_v44, %v841_v11 }
 0x113   : > { %v930_v4 = vpop.f32.mrf.mxu1  ;;  %v635_v54 = vpop.f32.mrf.mxu2 }
 0x114   : > { %3420 = vst [vmem:[%s4559_s29 + $0x18] sm:$0xff] %v923_v60  ;;  %v636_v28 = vadd.f32 %v635_v54, %v548_v22  ;;  %v5627_v54 = vld [vmem:[#allocation48_spill] sm:$0xff] }
 0x116   : > { %1161 = vmatmul.f32.gmra.mxu3 %v4317_v13  ;;  %1354 = vmatmul.f32.gmra.mxu1 %v4347_v50  ;;  %v848_v20 = vpop.f32.mrf.mxu0  ;;  %v739_v0 = vadd.f32 %v738_v52, %v636_v28  ;;  %v5628_v28 = vld [vmem:[#allocation14_spill] sm:$0xff] }
 0x118   : > { %v845_v38 = vadd.f32 %v844_v18, %v739_v0  ;;  %1035 = vmatmul.f32.gmra.mxu2 %v4377_v30 }
 0x119   : > { %v744_v37 = vpop.f32.mrf.mxu3  ;;  %1250 = vmatmul.f32.gmra.mxu0 %v4331_v31 }
 0x11a   : > { %v927_v21 = vadd.f32 %v926_v26, %v845_v38 }
 0x11b   : > { %v934_v9 = vpop.f32.mrf.mxu1  ;;  %v640_v44 = vpop.f32.mrf.mxu2 }
 0x11c   : > { %3421 = vst [vmem:[%s4559_s29 + $0x20] sm:$0xff] %v927_v21  ;;  %v641_v19 = vadd.f32 %v640_v44, %v552_v32 }
 0x11e   : > { %1165 = vmatmul.f32.gmra.mxu3 %v4349_v51  ;;  %1360 = vmatmul.f32.gmra.mxu1 %v4380_v34  ;;  %v852_v25 = vpop.f32.mrf.mxu0  ;;  %v745_v8 = vadd.f32 %v744_v37, %v641_v19  ;;  %v5629_v37 = vld [vmem:[#allocation18_spill] sm:$0xff] }
 0x11f   : > { %v5630_v19 = vld [vmem:[#allocation22_spill] sm:$0xff] }
 0x120   : > { %v849_v56 = vadd.f32 %v848_v20, %v745_v8  ;;  %1043 = vmatmul.f32.gmra.mxu2 %v4402_v14 }
 0x121   : > { %v750_v7 = vpop.f32.mrf.mxu3  ;;  %1255 = vmatmul.f32.gmra.mxu0 %v4363_v1 }
 0x122   : > { %v931_v15 = vadd.f32 %v930_v4, %v849_v56 }
 0x123   : > { %v938_v39 = vpop.f32.mrf.mxu1  ;;  %v645_v26 = vpop.f32.mrf.mxu2 }
 0x124   : > { %3422 = vst [vmem:[%s4559_s29 + $0x28] sm:$0xff] %v931_v15  ;;  %v646_v52 = vadd.f32 %v645_v26, %v556_v48 }
 0x126   : > { %1169 = vmatmul.f32.gmra.mxu3 %v4384_v41  ;;  %1366 = vmatmul.f32.gmra.mxu1 %v4408_v36  ;;  %v856_v6 = vpop.f32.mrf.mxu0  ;;  %v751_v11 = vadd.f32 %v750_v7, %v646_v52  ;;  %v5631_v7 = vld [vmem:[#allocation15_spill] sm:$0xff] }
 0x128   : > { %v853_v60 = vadd.f32 %v852_v25, %v751_v11  ;;  %1051 = vmatmul.f32.gmra.mxu2 %v4420_v55  ;;  %v5632_v25 = vld [vmem:[#allocation21_spill] sm:$0xff]  ;;  %v5636_v11 = vld [vmem:[#allocation20_spill] sm:$0xff] }
 0x129   : > { %v756_v18 = vpop.f32.mrf.mxu3  ;;  %1260 = vmatmul.f32.gmra.mxu0 %v5627_v54 }
 0x12a   : > { %v935_v3 = vadd.f32 %v934_v9, %v853_v60  ;;  %v5633_v9 = vld [vmem:[#allocation55_spill] sm:$0xff]  ;;  %v5637_v60 = vld [vmem:[#allocation28_spill] sm:$0xff] }
 0x12b   : > { %v942_v22 = vpop.f32.mrf.mxu1  ;;  %v650_v4 = vpop.f32.mrf.mxu2 }
 0x12c   : > { %3423 = vst [vmem:[%s4559_s29 + $0x30] sm:$0xff] %v935_v3  ;;  %v651_v20 = vadd.f32 %v650_v4, %v560_v23  ;;  %v5638_v3 = vld [vmem:[#allocation56_spill] sm:$0xff] }
 0x12e   : > { %1173 = vmatmul.f32.gmra.mxu3 %v5628_v28  ;;  %1372 = vmatmul.f32.gmra.mxu1 %v5629_v37  ;;  %v860_v38 = vpop.f32.mrf.mxu0  ;;  %v757_v32 = vadd.f32 %v756_v18, %v651_v20  ;;  %v5634_v18 = vld [vmem:[#allocation26_spill] sm:$0xff] }
 0x130   : > { %v857_v44 = vadd.f32 %v856_v6, %v757_v32  ;;  %1059 = vmatmul.f32.gmra.mxu2 %v5630_v19  ;;  %v5635_v6 = vld [vmem:[#allocation17_spill] sm:$0xff] }
 0x131   : > { %v762_v0 = vpop.f32.mrf.mxu3  ;;  %1265 = vmatmul.f32.gmra.mxu0 %v5631_v7  ;;  %v5652_v7 = vld [vmem:[#allocation40_spill] sm:$0xff] }
 0x132   : > { %v939_v58 = vadd.f32 %v938_v39, %v857_v44 }
 0x133   : > { %v946_v21 = vpop.f32.mrf.mxu1  ;;  %v655_v62 = vpop.f32.mrf.mxu2 }
 0x134   : > { %3424 = vst [vmem:[%s4559_s29 + $0x38] sm:$0xff] %v939_v58  ;;  %v656_v8 = vadd.f32 %v655_v62, %v5633_v9  ;;  %v5640_v62 = vld [vmem:[#allocation24_spill] sm:$0xff]  ;;  %v5641_v9 = vld [vmem:[#allocation25_spill] sm:$0xff] }
 0x136   : > { %1177 = vmatmul.f32.gmra.mxu3 %v4178_v17  ;;  %1378 = vmatmul.f32.gmra.mxu1 %v5632_v25  ;;  %v864_v48 = vpop.f32.mrf.mxu0  ;;  %v763_v15 = vadd.f32 %v762_v0, %v656_v8  ;;  %v5642_v8 = vld [vmem:[#allocation30_spill] sm:$0xff] }
 0x138   : > { %v861_v52 = vadd.f32 %v860_v38, %v763_v15  ;;  %1067 = vmatmul.f32.gmra.mxu2 %v5634_v18  ;;  %v5639_v38 = vld [vmem:[#allocation31_spill] sm:$0xff] }
 0x139   : > { %v768_v56 = vpop.f32.mrf.mxu3  ;;  %1270 = vmatmul.f32.gmra.mxu0 %v5635_v6  ;;  %v5647_v6 = vld [vmem:[#allocation38_spill] sm:$0xff] }
 0x13a   : > { %v943_v23 = vadd.f32 %v942_v22, %v861_v52  ;;  %v5643_v52 = vld [vmem:[#allocation57_spill] sm:$0xff] }
 0x13b   : > { %v950_v26 = vpop.f32.mrf.mxu1  ;;  %v660_v39 = vpop.f32.mrf.mxu2 }
 0x13c   : > { %3425 = vst [vmem:[%s4559_s29 + $0x40] sm:$0xff] %v943_v23  ;;  %v661_v4 = vadd.f32 %v660_v39, %v5638_v3 }
 0x13e   : > { %1181 = vmatmul.f32.gmra.mxu3 %v5636_v11  ;;  %1384 = vmatmul.f32.gmra.mxu1 %v5637_v60  ;;  %v868_v32 = vpop.f32.mrf.mxu0  ;;  %v769_v44 = vadd.f32 %v768_v56, %v661_v4 }
 0x140   : > { %v865_v58 = vadd.f32 %v864_v48, %v769_v44  ;;  %1075 = vmatmul.f32.gmra.mxu2 %v5639_v38  ;;  %v5644_v48 = vld [vmem:[#allocation35_spill] sm:$0xff]  ;;  %v5645_v44 = vld [vmem:[#allocation29_spill] sm:$0xff] }
 0x141   : > { %v774_v20 = vpop.f32.mrf.mxu3  ;;  %1275 = vmatmul.f32.gmra.mxu0 %v5640_v62  ;;  %v5646_v62 = vld [vmem:[#allocation33_spill] sm:$0xff] }
 0x142   : > { %v947_v15 = vadd.f32 %v946_v21, %v865_v58  ;;  %v5648_v58 = vld [vmem:[#allocation58_spill] sm:$0xff] }
 0x143   : > { %v954_v0 = vpop.f32.mrf.mxu1  ;;  %v665_v22 = vpop.f32.mrf.mxu2 }
 0x144   : > { %3426 = vst [vmem:[%s4559_s29 + $0x48] sm:$0xff] %v947_v15  ;;  %v666_v23 = vadd.f32 %v665_v22, %v5643_v52 }
 0x146   : > { %1185 = vmatmul.f32.gmra.mxu3 %v5641_v9  ;;  %1390 = vmatmul.f32.gmra.mxu1 %v5642_v8  ;;  %v872_v3 = vpop.f32.mrf.mxu0  ;;  %v775_v60 = vadd.f32 %v774_v20, %v666_v23 }
 0x148   : > { %v869_v4 = vadd.f32 %v868_v32, %v775_v60  ;;  %1083 = vmatmul.f32.gmra.mxu2 %v5644_v48  ;;  %v5649_v60 = vld [vmem:[#allocation41_spill] sm:$0xff]  ;;  %v5650_v32 = vld [vmem:[#allocation34_spill] sm:$0xff] }
 0x149   : > { %v780_v39 = vpop.f32.mrf.mxu3  ;;  %1280 = vmatmul.f32.gmra.mxu0 %v5645_v44  ;;  %v5651_v44 = vld [vmem:[#allocation36_spill] sm:$0xff] }
 0x14a   : > { %v951_v8 = vadd.f32 %v950_v26, %v869_v4 }
 0x14b   : > { %v958_v56 = vpop.f32.mrf.mxu1  ;;  %v670_v21 = vpop.f32.mrf.mxu2 }
 0x14c   : > { %3427 = vst [vmem:[%s4559_s29 + $0x50] sm:$0xff] %v951_v8  ;;  %v671_v15 = vadd.f32 %v670_v21, %v5648_v58  ;;  %v5653_v8 = vld [vmem:[#allocation59_spill] sm:$0xff] }
 0x14e   : > { %1189 = vmatmul.f32.gmra.mxu3 %v5646_v62  ;;  %1396 = vmatmul.f32.gmra.mxu1 %v5647_v6  ;;  %v876_v52 = vpop.f32.mrf.mxu0  ;;  %v781_v25 = vadd.f32 %v780_v39, %v671_v15 }
 0x150   : > { %v873_v23 = vadd.f32 %v872_v3, %v781_v25  ;;  %1091 = vmatmul.f32.gmra.mxu2 %v5649_v60  ;;  %v5654_v25 = vld [vmem:[#allocation44_spill] sm:$0xff]  ;;  %v5655_v3 = vld [vmem:[#allocation39_spill] sm:$0xff] }
 0x151   : > { %v786_v22 = vpop.f32.mrf.mxu3  ;;  %1285 = vmatmul.f32.gmra.mxu0 %v5650_v32  ;;  %v5656_v32 = vld [vmem:[#allocation45_spill] sm:$0xff] }
 0x152   : > { %v955_v6 = vadd.f32 %v954_v0, %v873_v23 }
 0x153   : > { %v962_v20 = vpop.f32.mrf.mxu1  ;;  %v675_v26 = vpop.f32.mrf.mxu2 }
 0x154   : > { %3428 = vst [vmem:[%s4559_s29 + $0x58] sm:$0xff] %v955_v6  ;;  %v676_v4 = vadd.f32 %v675_v26, %v5653_v8  ;;  %v5657_v6 = vld [vmem:[#allocation60_spill] sm:$0xff] }
 0x156   : > { %1193 = vmatmul.f32.gmra.mxu3 %v5651_v44  ;;  %1402 = vmatmul.f32.gmra.mxu1 %v5652_v7  ;;  %v880_v58 = vpop.f32.mrf.mxu0  ;;  %v787_v37 = vadd.f32 %v786_v22, %v676_v4 }
 0x158   : > { %v877_v15 = vadd.f32 %v876_v52, %v787_v37  ;;  %1099 = vmatmul.f32.gmra.mxu2 %v5654_v25  ;;  %v5658_v37 = vld [vmem:[#allocation49_spill] sm:$0xff] }
 0x159   : > { %v792_v21 = vpop.f32.mrf.mxu3  ;;  %1290 = vmatmul.f32.gmra.mxu0 %v5655_v3 }
 0x15a   : > { %v959_v7 = vadd.f32 %v958_v56, %v877_v15 }
 0x15b   : > { %v966_v39 = vpop.f32.mrf.mxu1  ;;  %v680_v0 = vpop.f32.mrf.mxu2 }
 0x15c   : > { %3429 = vst [vmem:[%s4559_s29 + $0x60] sm:$0xff] %v959_v7  ;;  %v681_v23 = vadd.f32 %v680_v0, %v5657_v6  ;;  %v5659_v7 = vld [vmem:[#allocation61_spill] sm:$0xff] }
 0x15e   : > { %1197 = vmatmul.f32.gmra.mxu3 %v4340_v40  ;;  %1408 = vmatmul.f32.gmra.mxu1 %v5656_v32  ;;  %v884_v8 = vpop.f32.mrf.mxu0  ;;  %v793_v54 = vadd.f32 %v792_v21, %v681_v23 }
 0x160   : > { %v881_v4 = vadd.f32 %v880_v58, %v793_v54  ;;  %1107 = vmatmul.f32.gmra.mxu2 %v5658_v37  ;;  %v5660_v54 = vld [vmem:[#allocation53_spill] sm:$0xff] }
 0x161   : > { %v798_v26 = vpop.f32.mrf.mxu3  ;;  %1295 = vmatmul.f32.gmra.mxu0 %v4356_v57 }
 0x162   : > { %v963_v52 = vadd.f32 %v962_v20, %v881_v4  ;;  %v5661_v4 = vld [vmem:[#allocation62_spill] sm:$0xff] }
 0x163   : > { %v970_v22 = vpop.f32.mrf.mxu1  ;;  %v685_v56 = vpop.f32.mrf.mxu2 }
 0x164   : > { %3430 = vst [vmem:[%s4559_s29 + $0x68] sm:$0xff] %v963_v52  ;;  %v686_v15 = vadd.f32 %v685_v56, %v5659_v7 }
 0x166   : > { %1201 = vmatmul.f32.gmra.mxu3 %v4382_v35  ;;  %1414 = vmatmul.f32.gmra.mxu1 %v4405_v46  ;;  %v888_v6 = vpop.f32.mrf.mxu0  ;;  %v799_v32 = vadd.f32 %v798_v26, %v686_v15 }
 0x168   : > { %v885_v23 = vadd.f32 %v884_v8, %v799_v32  ;;  %1115 = vmatmul.f32.gmra.mxu2 %v5660_v54  ;;  %v5662_v32 = vld [vmem:[#allocation23_spill] sm:$0xff] }
 0x169   : > { %v804_v0 = vpop.f32.mrf.mxu3  ;;  %1300 = vmatmul.f32.gmra.mxu0 %v4393_v2 }
 0x16a   : > { %v967_v58 = vadd.f32 %v966_v39, %v885_v23 }
 0x16b   : > { %v1325_v21 = vpop.f32.mrf.mxu1  ;;  %v690_v20 = vpop.f32.mrf.mxu2 }
 0x16c   : > { %3431 = vst [vmem:[%s4559_s29 + $0x70] sm:$0xff] %v967_v58  ;;  %v691_v52 = vadd.f32 %v690_v20, %v5661_v4 }
 0x16e   : > { %1520 = vmatmul.f32.vlgmr.msrb.gmra.mxu3 %v4176_v16  ;;  %1752 = vmatmul.f32.vlgmr.msrb.gmra.mxu1 %v4176_v16  ;;  %v1226_v7 = vpop.f32.mrf.mxu0  ;;  %v805_v46 = vadd.f32 %v804_v0, %v691_v52 }
 0x170   : > { %v889_v15 = vadd.f32 %v888_v6, %v805_v46  ;;  %1438 = vmatmul.f32.vlgmr.msrb.gmra.mxu2 %v4176_v16 }
 0x171   : > { %v1142_v56 = vpop.f32.mrf.mxu3  ;;  %1606 = vmatmul.f32.vlgmr.msrb.gmra.mxu0 %v5662_v32 }
 0x172   : > { %v971_v8 = vadd.f32 %v970_v22, %v889_v15 }
 0x173   : > { %v1331_v26 = vpop.f32.mrf.mxu1  ;;  %v996_v2 = vpop.f32.mrf.mxu2 }
 0x174   : > { %3432 = vst [vmem:[%s4559_s29 + $0x78] sm:$0xff] %v971_v8  ;;  %v1143_v39 = vadd.f32 %v1142_v56, %v996_v2 }
 0x176   : > { %1524 = vmatmul.f32.gmra.mxu3 %v4192_v24  ;;  %1756 = vmatmul.f32.gmra.mxu1 %v4192_v24  ;;  %v1231_v58 = vpop.f32.mrf.mxu0  ;;  %v1227_v20 = vadd.f32 %v1226_v7, %v1143_v39 }
 0x178   : > { %v4657_v57 = vadd.f32 %v1325_v21, %v1227_v20  ;;  %1442 = vmatmul.f32.gmra.mxu2 %v4192_v24 }
 0x179   : > { %v1146_v23 = vpop.f32.mrf.mxu3  ;;  %1614 = vmatmul.f32.gmra.mxu0 %v4247_v47 }
 0x17b   : > { %v1337_v4 = vpop.f32.mrf.mxu1  ;;  %v1004_v46 = vpop.f32.mrf.mxu2 }
 0x17c   : > { %v1147_v0 = vadd.f32 %v1146_v23, %v1004_v46 }
 0x17e   : > { %1528 = vmatmul.f32.gmra.mxu3 %v4207_v29  ;;  %1760 = vmatmul.f32.gmra.mxu1 %v4207_v29  ;;  %v1236_v6 = vpop.f32.mrf.mxu0  ;;  %v1232_v52 = vadd.f32 %v1231_v58, %v1147_v0 }
 0x180   : > { %v4663_v56 = vadd.f32 %v1331_v26, %v1232_v52  ;;  %1446 = vmatmul.f32.gmra.mxu2 %v4207_v29 }
 0x181   : > { %v1150_v22 = vpop.f32.mrf.mxu3  ;;  %1622 = vmatmul.f32.gmra.mxu0 %v4281_v61 }
 0x183   : > { %v1343_v2 = vpop.f32.mrf.mxu1  ;;  %v1012_v21 = vpop.f32.mrf.mxu2 }
 0x184   : > { %v1151_v7 = vadd.f32 %v1150_v22, %v1012_v21 }
 0x186   : > { %1532 = vmatmul.f32.gmra.mxu3 %v4243_v45  ;;  %1764 = vmatmul.f32.gmra.mxu1 %v4243_v45  ;;  %v1241_v8 = vpop.f32.mrf.mxu0  ;;  %v1237_v39 = vadd.f32 %v1236_v6, %v1151_v7 }
 0x188   : > { %v4669_v20 = vadd.f32 %v1337_v4, %v1237_v39  ;;  %1450 = vmatmul.f32.gmra.mxu2 %v4243_v45 }
 0x189   : > { %v1154_v15 = vpop.f32.mrf.mxu3  ;;  %1630 = vmatmul.f32.gmra.mxu0 %v4309_v10 }
 0x18b   : > { %v1349_v23 = vpop.f32.mrf.mxu1  ;;  %v1020_v26 = vpop.f32.mrf.mxu2 }
 0x18c   : > { %v1155_v58 = vadd.f32 %v1154_v15, %v1020_v26 }
 0x18e   : > { %1536 = vmatmul.f32.gmra.mxu3 %v4285_v63  ;;  %1768 = vmatmul.f32.gmra.mxu1 %v4285_v63  ;;  %v1246_v0 = vpop.f32.mrf.mxu0  ;;  %v1242_v52 = vadd.f32 %v1241_v8, %v1155_v58 }
 0x190   : > { %v4675_v21 = vadd.f32 %v1343_v2, %v1242_v52  ;;  %1454 = vmatmul.f32.gmra.mxu2 %v4285_v63 }
 0x191   : > { %v1158_v46 = vpop.f32.mrf.mxu3  ;;  %1638 = vmatmul.f32.gmra.mxu0 %v4344_v43 }
 0x193   : > { %v1355_v22 = vpop.f32.mrf.mxu1  ;;  %v1028_v4 = vpop.f32.mrf.mxu2 }
 0x194   : > { %v1159_v6 = vadd.f32 %v1158_v46, %v1028_v4 }
 0x196   : > { %1540 = vmatmul.f32.gmra.mxu3 %v4317_v13  ;;  %1772 = vmatmul.f32.gmra.mxu1 %v4317_v13  ;;  %v1251_v39 = vpop.f32.mrf.mxu0  ;;  %v1247_v10 = vadd.f32 %v1246_v0, %v1159_v6 }
 0x198   : > { %v4681_v26 = vadd.f32 %v1349_v23, %v1247_v10  ;;  %1458 = vmatmul.f32.gmra.mxu2 %v4317_v13 }
 0x199   : > { %v1162_v7 = vpop.f32.mrf.mxu3  ;;  %1646 = vmatmul.f32.gmra.mxu0 %v4377_v30 }
 0x19b   : > { %v1361_v15 = vpop.f32.mrf.mxu1  ;;  %v1036_v2 = vpop.f32.mrf.mxu2 }
 0x19c   : > { %v1163_v8 = vadd.f32 %v1162_v7, %v1036_v2 }
 0x19e   : > { %1544 = vmatmul.f32.gmra.mxu3 %v4349_v51  ;;  %1776 = vmatmul.f32.gmra.mxu1 %v4349_v51  ;;  %v1256_v52 = vpop.f32.mrf.mxu0  ;;  %v1252_v43 = vadd.f32 %v1251_v39, %v1163_v8 }
 0x1a0   : > { %v4687_v4 = vadd.f32 %v1355_v22, %v1252_v43  ;;  %1462 = vmatmul.f32.gmra.mxu2 %v4349_v51 }
 0x1a1   : > { %v1166_v58 = vpop.f32.mrf.mxu3  ;;  %1654 = vmatmul.f32.gmra.mxu0 %v4402_v14 }
 0x1a3   : > { %v1367_v46 = vpop.f32.mrf.mxu1  ;;  %v1044_v10 = vpop.f32.mrf.mxu2 }
 0x1a4   : > { %v1167_v23 = vadd.f32 %v1166_v58, %v1044_v10 }
 0x1a6   : > { %1548 = vmatmul.f32.gmra.mxu3 %v4384_v41  ;;  %1780 = vmatmul.f32.gmra.mxu1 %v4384_v41  ;;  %v1261_v6 = vpop.f32.mrf.mxu0  ;;  %v1257_v30 = vadd.f32 %v1256_v52, %v1167_v23 }
 0x1a8   : > { %v4693_v2 = vadd.f32 %v1361_v15, %v1257_v30  ;;  %1466 = vmatmul.f32.gmra.mxu2 %v4384_v41 }
 0x1a9   : > { %v1170_v0 = vpop.f32.mrf.mxu3  ;;  %1662 = vmatmul.f32.gmra.mxu0 %v4420_v55 }
 0x1ab   : > { %v1373_v7 = vpop.f32.mrf.mxu1  ;;  %v1052_v43 = vpop.f32.mrf.mxu2 }
 0x1ac   : > { %v1171_v22 = vadd.f32 %v1170_v0, %v1052_v43 }
 0x1ae   : > { %1552 = vmatmul.f32.gmra.mxu3 %v5628_v28  ;;  %1784 = vmatmul.f32.gmra.mxu1 %v5628_v28  ;;  %v1266_v8 = vpop.f32.mrf.mxu0  ;;  %v1262_v14 = vadd.f32 %v1261_v6, %v1171_v22 }
 0x1b0   : > { %v4699_v10 = vadd.f32 %v1367_v46, %v1262_v14  ;;  %1470 = vmatmul.f32.gmra.mxu2 %v5628_v28 }
 0x1b1   : > { %v1174_v39 = vpop.f32.mrf.mxu3  ;;  %1670 = vmatmul.f32.gmra.mxu0 %v5630_v19 }
 0x1b3   : > { %v1379_v58 = vpop.f32.mrf.mxu1  ;;  %v1060_v30 = vpop.f32.mrf.mxu2 }
 0x1b4   : > { %v1175_v15 = vadd.f32 %v1174_v39, %v1060_v30 }
 0x1b6   : > { %1556 = vmatmul.f32.gmra.mxu3 %v4178_v17  ;;  %1788 = vmatmul.f32.gmra.mxu1 %v4178_v17  ;;  %v1271_v23 = vpop.f32.mrf.mxu0  ;;  %v1267_v55 = vadd.f32 %v1266_v8, %v1175_v15 }
 0x1b8   : > { %v4705_v43 = vadd.f32 %v1373_v7, %v1267_v55  ;;  %1474 = vmatmul.f32.gmra.mxu2 %v4178_v17 }
 0x1b9   : > { %v1178_v52 = vpop.f32.mrf.mxu3  ;;  %1678 = vmatmul.f32.gmra.mxu0 %v5634_v18 }
 0x1bb   : > { %v1385_v0 = vpop.f32.mrf.mxu1  ;;  %v1068_v14 = vpop.f32.mrf.mxu2 }
 0x1bc   : > { %v1179_v46 = vadd.f32 %v1178_v52, %v1068_v14 }
 0x1be   : > { %1560 = vmatmul.f32.gmra.mxu3 %v5636_v11  ;;  %1792 = vmatmul.f32.gmra.mxu1 %v5636_v11  ;;  %v1276_v22 = vpop.f32.mrf.mxu0  ;;  %v1272_v19 = vadd.f32 %v1271_v23, %v1179_v46 }
 0x1c0   : > { %v4711_v30 = vadd.f32 %v1379_v58, %v1272_v19  ;;  %1478 = vmatmul.f32.gmra.mxu2 %v5636_v11 }
 0x1c1   : > { %v1182_v6 = vpop.f32.mrf.mxu3  ;;  %1686 = vmatmul.f32.gmra.mxu0 %v5639_v38 }
 0x1c3   : > { %v1391_v39 = vpop.f32.mrf.mxu1  ;;  %v1076_v55 = vpop.f32.mrf.mxu2 }
 0x1c4   : > { %v1183_v7 = vadd.f32 %v1182_v6, %v1076_v55 }
 0x1c6   : > { %1564 = vmatmul.f32.gmra.mxu3 %v5641_v9  ;;  %1796 = vmatmul.f32.gmra.mxu1 %v5641_v9  ;;  %v1281_v15 = vpop.f32.mrf.mxu0  ;;  %v1277_v18 = vadd.f32 %v1276_v22, %v1183_v7 }
 0x1c8   : > { %v4717_v14 = vadd.f32 %v1385_v0, %v1277_v18  ;;  %1482 = vmatmul.f32.gmra.mxu2 %v5641_v9  ;;  %v311_v18 = vld [vmem:[%s5576_s1 + $0x18] sm:$0xff] }
 0x1c9   : > { %v1186_v8 = vpop.f32.mrf.mxu3  ;;  %1694 = vmatmul.f32.gmra.mxu0 %v5644_v48  ;;  %v2210_v0 = vand.u32 4294901760, %v311_v18 }
 0x1cb   : > { %v1397_v52 = vpop.f32.mrf.mxu1  ;;  %v1084_v19 = vpop.f32.mrf.mxu2  ;;  %2211 = vmatpush.msrb.mxu2 %v2210_v0  ;;  %v2357_v7 = vsub.f32 %v311_v18, %v2210_v0  ;;  %2542 = vmatpush.msrb.mxu1 %v2210_v0 }
 0x1cc   : > { %v1187_v58 = vadd.f32 %v1186_v8, %v1084_v19 }
 0x1cd   : > { %2444 = vmatpush.msrb.mxu0 %v2357_v7 }
 0x1ce   : > { %1568 = vmatmul.f32.gmra.mxu3 %v5646_v62  ;;  %1800 = vmatmul.f32.gmra.mxu1 %v5646_v62  ;;  %v1286_v46 = vpop.f32.mrf.mxu0  ;;  %v1282_v38 = vadd.f32 %v1281_v15, %v1187_v58  ;;  %v2358_v15 = vand.u32 4294901760, %v2357_v7 }
 0x1d0   : > { %v4723_v55 = vadd.f32 %v1391_v39, %v1282_v38  ;;  %1486 = vmatmul.f32.gmra.mxu2 %v5646_v62 }
 0x1d1   : > { %v1190_v23 = vpop.f32.mrf.mxu3  ;;  %1702 = vmatmul.f32.gmra.mxu0 %v5649_v60  ;;  %v2359_v60 = vsub.f32 %v2357_v7, %v2358_v15 }
 0x1d3   : > { %v1403_v6 = vpop.f32.mrf.mxu1  ;;  %v1092_v22 = vpop.f32.mrf.mxu2  ;;  %v2360_v18 = vand.u32 4294901760, %v2359_v60 }
 0x1d4   : > { %v1191_v8 = vadd.f32 %v1190_v23, %v1092_v22 }
 0x1d5   : > { %2361 = vmatpush.msrb.mxu3 %v2360_v18 }
 0x1d6   : > { %1572 = vmatmul.f32.gmra.mxu3 %v5651_v44  ;;  %1804 = vmatmul.f32.gmra.mxu1 %v5651_v44  ;;  %v1291_v39 = vpop.f32.mrf.mxu0  ;;  %v1287_v19 = vadd.f32 %v1286_v46, %v1191_v8 }
 0x1d8   : > { %v4732_v48 = vadd.f32 %v1397_v52, %v1287_v19  ;;  %1490 = vmatmul.f32.gmra.mxu2 %v5651_v44 }
 0x1d9   : > { %v1194_v38 = vpop.f32.mrf.mxu3  ;;  %1710 = vmatmul.f32.gmra.mxu0 %v5654_v25 }
 0x1db   : > { %v1409_v58 = vpop.f32.mrf.mxu1  ;;  %v1100_v61 = vpop.f32.mrf.mxu2 }
 0x1dc   : > { %v1195_v23 = vadd.f32 %v1194_v38, %v1100_v61 }
 0x1de   : > { %1576 = vmatmul.f32.gmra.mxu3 %v4340_v40  ;;  %1808 = vmatmul.f32.gmra.mxu1 %v4340_v40  ;;  %v1296_v47 = vpop.f32.mrf.mxu0  ;;  %v1292_v32 = vadd.f32 %v1291_v39, %v1195_v23 }
 0x1e0   : > { %v4738_v8 = vadd.f32 %v1403_v6, %v1292_v32  ;;  %1494 = vmatmul.f32.gmra.mxu2 %v4340_v40  ;;  %v5663_v32 = vld [vmem:[#allocation19_spill] sm:$0xff] }
 0x1e1   : > { %v1198_v22 = vpop.f32.mrf.mxu3  ;;  %1718 = vmatmul.f32.gmra.mxu0 %v5658_v37 }
 0x1e3   : > { %v1415_v46 = vpop.f32.mrf.mxu1  ;;  %v1108_v52 = vpop.f32.mrf.mxu2 }
 0x1e4   : > { %v1199_v7 = vadd.f32 %v1198_v22, %v1108_v52 }
 0x1e6   : > { %1580 = vmatmul.f32.gmra.mxu3 %v4382_v35  ;;  %1812 = vmatmul.f32.gmra.mxu1 %v4382_v35  ;;  %v1301_v19 = vpop.f32.mrf.mxu0  ;;  %v1297_v18 = vadd.f32 %v1296_v47, %v1199_v7  ;;  %v5664_v7 = vld [vmem:[#allocation16_spill] sm:$0xff] }
 0x1e8   : > { %v4746_v38 = vadd.f32 %v1409_v58, %v1297_v18  ;;  %1498 = vmatmul.f32.gmra.mxu2 %v4382_v35 }
 0x1e9   : > { %v1202_v60 = vpop.f32.mrf.mxu3  ;;  %1726 = vmatmul.f32.gmra.mxu0 %v5660_v54 }
 0x1eb   : > { %v4744_v61 = vpop.f32.mrf.mxu1  ;;  %v1116_v6 = vpop.f32.mrf.mxu2 }
 0x1ec   : > { %v1203_v39 = vadd.f32 %v1202_v60, %v1116_v6 }
 0x1ee   : > { %1935 = vmatmul.f32.vlgmr.msra.gmra.mxu3 %v5663_v32  ;;  %2131 = vmatmul.f32.vlgmr.msra.gmra.mxu1 %v4176_v16  ;;  %v4752_v22 = vpop.f32.mrf.mxu0  ;;  %v1302_v47 = vadd.f32 %v1301_v19, %v1203_v39 }
 0x1ef   : > { %2740 = vmatpush.msra.mxu3 %v2210_v0 }
 0x1f0   : > { %v4756_v58 = vadd.f32 %v1415_v46, %v1302_v47  ;;  %1836 = vmatmul.f32.vlgmr.msra.gmra.mxu2 %v5664_v7 }
 0x1f1   : > { %v1521_v23 = vpop.f32.mrf.mxu3  ;;  %2049 = vmatmul.f32.vlgmr.msra.gmra.mxu0 %v4176_v16  ;;  %2658 = vmatpush.msra.mxu2 %v2358_v15 }
 0x1f3   : > { %v4754_v52 = vpop.f32.mrf.mxu1  ;;  %v1439_v0 = vpop.f32.mrf.mxu2 }
 0x1f4   : > { %v1440_v60 = vadd.f32 %v1439_v0, %v4657_v57 }
 0x1f6   : > { %1941 = vmatmul.f32.gmra.mxu3 %v4217_v33  ;;  %2135 = vmatmul.f32.gmra.mxu1 %v4192_v24  ;;  %v4763_v6 = vpop.f32.mrf.mxu0  ;;  %v1522_v19 = vadd.f32 %v1521_v23, %v1440_v60 }
 0x1f8   : > { %3433 = vst [vmem:[%s4768_s11] sm:$0xff] %v1522_v19  ;;  %1841 = vmatmul.f32.gmra.mxu2 %v4203_v27 }
 0x1f9   : > { %v1525_v18 = vpop.f32.mrf.mxu3  ;;  %2053 = vmatmul.f32.gmra.mxu0 %v4192_v24 }
 0x1fb   : > { %v4765_v39 = vpop.f32.mrf.mxu1  ;;  %v1443_v57 = vpop.f32.mrf.mxu2 }
 0x1fc   : > { %v1444_v15 = vadd.f32 %v1443_v57, %v4663_v56 }
 0x1fe   : > { %1947 = vmatmul.f32.gmra.mxu3 %v4253_v49  ;;  %2139 = vmatmul.f32.gmra.mxu1 %v4207_v29  ;;  %v4776_v23 = vpop.f32.mrf.mxu0  ;;  %v1526_v47 = vadd.f32 %v1525_v18, %v1444_v15 }
 0x200   : > { %3434 = vst [vmem:[%s4768_s11 + $0x8] sm:$0xff] %v1526_v47  ;;  %1846 = vmatmul.f32.gmra.mxu2 %v4236_v42 }
 0x201   : > { %v1529_v46 = vpop.f32.mrf.mxu3  ;;  %2057 = vmatmul.f32.gmra.mxu0 %v4207_v29 }
 0x203   : > { %v4778_v0 = vpop.f32.mrf.mxu1  ;;  %v1447_v60 = vpop.f32.mrf.mxu2 }
 0x204   : > { %v1448_v19 = vadd.f32 %v1447_v60, %v4669_v20 }
 0x206   : > { %1953 = vmatmul.f32.gmra.mxu3 %v4277_v59  ;;  %2143 = vmatmul.f32.gmra.mxu1 %v4243_v45  ;;  %v4786_v57 = vpop.f32.mrf.mxu0  ;;  %v1530_v54 = vadd.f32 %v1529_v46, %v1448_v19 }
 0x208   : > { %3435 = vst [vmem:[%s4768_s11 + $0x10] sm:$0xff] %v1530_v54  ;;  %1851 = vmatmul.f32.gmra.mxu2 %v4261_v53 }
 0x209   : > { %v1533_v56 = vpop.f32.mrf.mxu3  ;;  %2061 = vmatmul.f32.gmra.mxu0 %v4243_v45 }
 0x20b   : > { %v4788_v18 = vpop.f32.mrf.mxu1  ;;  %v1451_v15 = vpop.f32.mrf.mxu2 }
 0x20c   : > { %v1452_v47 = vadd.f32 %v1451_v15, %v4675_v21 }
 0x20e   : > { %1959 = vmatmul.f32.gmra.mxu3 %v4315_v12  ;;  %2147 = vmatmul.f32.gmra.mxu1 %v4285_v63  ;;  %v4796_v60 = vpop.f32.mrf.mxu0  ;;  %v1534_v37 = vadd.f32 %v1533_v56, %v1452_v47 }
 0x210   : > { %3436 = vst [vmem:[%s4768_s11 + $0x18] sm:$0xff] %v1534_v37  ;;  %1856 = vmatmul.f32.gmra.mxu2 %v4299_v5 }
 0x211   : > { %v1537_v20 = vpop.f32.mrf.mxu3  ;;  %2065 = vmatmul.f32.gmra.mxu0 %v4285_v63 }
 0x213   : > { %v4798_v46 = vpop.f32.mrf.mxu1  ;;  %v1455_v54 = vpop.f32.mrf.mxu2 }
 0x214   : > { %5665 = vst [vmem:[#allocation14_spill] sm:$0xff] %v4798_v46  ;;  %v1456_v19 = vadd.f32 %v1455_v54, %v4681_v26 }
 0x216   : > { %1965 = vmatmul.f32.gmra.mxu3 %v4347_v50  ;;  %2151 = vmatmul.f32.gmra.mxu1 %v4317_v13  ;;  %v4806_v15 = vpop.f32.mrf.mxu0  ;;  %v1538_v25 = vadd.f32 %v1537_v20, %v1456_v19 }
 0x218   : > { %3437 = vst [vmem:[%s4768_s11 + $0x20] sm:$0xff] %v1538_v25  ;;  %1861 = vmatmul.f32.gmra.mxu2 %v4331_v31 }
 0x219   : > { %v1541_v21 = vpop.f32.mrf.mxu3  ;;  %2069 = vmatmul.f32.gmra.mxu0 %v4317_v13 }
 0x21b   : > { %v4808_v56 = vpop.f32.mrf.mxu1  ;;  %v1459_v37 = vpop.f32.mrf.mxu2 }
 0x21c   : > { %5666 = vst [vmem:[#allocation55_spill] sm:$0xff] %v4808_v56  ;;  %v1460_v47 = vadd.f32 %v1459_v37, %v4687_v4 }
 0x21e   : > { %1971 = vmatmul.f32.gmra.mxu3 %v4380_v34  ;;  %2155 = vmatmul.f32.gmra.mxu1 %v4349_v51  ;;  %v4816_v54 = vpop.f32.mrf.mxu0  ;;  %v1542_v46 = vadd.f32 %v1541_v21, %v1460_v47  ;;  %v5672_v47 = vld [vmem:[#allocation18_spill] sm:$0xff] }
 0x21f   : > { %5667 = vst [vmem:[#allocation20_spill] sm:$0xff] %v4816_v54 }
 0x220   : > { %3438 = vst [vmem:[%s4768_s11 + $0x28] sm:$0xff] %v1542_v46  ;;  %1866 = vmatmul.f32.gmra.mxu2 %v4363_v1  ;;  %v5671_v46 = vld [vmem:[#allocation48_spill] sm:$0xff] }
 0x221   : > { %v1545_v26 = vpop.f32.mrf.mxu3  ;;  %2073 = vmatmul.f32.gmra.mxu0 %v4349_v51 }
 0x223   : > { %v4818_v20 = vpop.f32.mrf.mxu1  ;;  %v1463_v25 = vpop.f32.mrf.mxu2 }
 0x224   : > { %5668 = vst [vmem:[#allocation56_spill] sm:$0xff] %v4818_v20  ;;  %v1464_v19 = vadd.f32 %v1463_v25, %v4693_v2 }
 0x226   : > { %1977 = vmatmul.f32.gmra.mxu3 %v4408_v36  ;;  %2159 = vmatmul.f32.gmra.mxu1 %v4384_v41  ;;  %v4826_v37 = vpop.f32.mrf.mxu0  ;;  %v1546_v56 = vadd.f32 %v1545_v26, %v1464_v19  ;;  %v5676_v19 = vld [vmem:[#allocation21_spill] sm:$0xff] }
 0x227   : > { %5669 = vst [vmem:[#allocation25_spill] sm:$0xff] %v4826_v37 }
 0x228   : > { %3439 = vst [vmem:[%s4768_s11 + $0x30] sm:$0xff] %v1546_v56  ;;  %1871 = vmatmul.f32.gmra.mxu2 %v5671_v46  ;;  %v5675_v56 = vld [vmem:[#allocation15_spill] sm:$0xff] }
 0x229   : > { %v1549_v4 = vpop.f32.mrf.mxu3  ;;  %2077 = vmatmul.f32.gmra.mxu0 %v4384_v41 }
 0x22b   : > { %v4828_v21 = vpop.f32.mrf.mxu1  ;;  %v1467_v20 = vpop.f32.mrf.mxu2 }
 0x22c   : > { %5670 = vst [vmem:[#allocation57_spill] sm:$0xff] %v4828_v21  ;;  %v1468_v54 = vadd.f32 %v1467_v20, %v4699_v10 }
 0x22e   : > { %1983 = vmatmul.f32.gmra.mxu3 %v5672_v47  ;;  %2163 = vmatmul.f32.gmra.mxu1 %v5628_v28  ;;  %v4836_v25 = vpop.f32.mrf.mxu0  ;;  %v1550_v37 = vadd.f32 %v1549_v4, %v1468_v54  ;;  %v5679_v4 = vld [vmem:[#allocation17_spill] sm:$0xff] }
 0x22f   : > { %5673 = vst [vmem:[#allocation33_spill] sm:$0xff] %v4836_v25 }
 0x230   : > { %3440 = vst [vmem:[%s4768_s11 + $0x38] sm:$0xff] %v1550_v37  ;;  %1876 = vmatmul.f32.gmra.mxu2 %v5675_v56  ;;  %v5680_v37 = vld [vmem:[#allocation28_spill] sm:$0xff] }
 0x231   : > { %v1553_v2 = vpop.f32.mrf.mxu3  ;;  %2081 = vmatmul.f32.gmra.mxu0 %v5628_v28 }
 0x233   : > { %v4838_v26 = vpop.f32.mrf.mxu1  ;;  %v1471_v21 = vpop.f32.mrf.mxu2 }
 0x234   : > { %5674 = vst [vmem:[#allocation58_spill] sm:$0xff] %v4838_v26  ;;  %v1472_v47 = vadd.f32 %v1471_v21, %v4705_v43 }
 0x236   : > { %1989 = vmatmul.f32.gmra.mxu3 %v5676_v19  ;;  %2167 = vmatmul.f32.gmra.mxu1 %v4178_v17  ;;  %v4846_v20 = vpop.f32.mrf.mxu0  ;;  %v1554_v25 = vadd.f32 %v1553_v2, %v1472_v47  ;;  %v5683_v2 = vld [vmem:[#allocation24_spill] sm:$0xff] }
 0x237   : > { %5677 = vst [vmem:[#allocation36_spill] sm:$0xff] %v4846_v20 }
 0x238   : > { %3441 = vst [vmem:[%s4768_s11 + $0x40] sm:$0xff] %v1554_v25  ;;  %1881 = vmatmul.f32.gmra.mxu2 %v5679_v4  ;;  %v5684_v25 = vld [vmem:[#allocation30_spill] sm:$0xff] }
 0x239   : > { %v1557_v10 = vpop.f32.mrf.mxu3  ;;  %2085 = vmatmul.f32.gmra.mxu0 %v4178_v17 }
 0x23b   : > { %v4848_v54 = vpop.f32.mrf.mxu1  ;;  %v1475_v26 = vpop.f32.mrf.mxu2 }
 0x23c   : > { %5678 = vst [vmem:[#allocation59_spill] sm:$0xff] %v4848_v54  ;;  %v1476_v19 = vadd.f32 %v1475_v26, %v4711_v30 }
 0x23e   : > { %1995 = vmatmul.f32.gmra.mxu3 %v5680_v37  ;;  %2171 = vmatmul.f32.gmra.mxu1 %v5636_v11  ;;  %v4856_v21 = vpop.f32.mrf.mxu0  ;;  %v1558_v20 = vadd.f32 %v1557_v10, %v1476_v19  ;;  %v5687_v10 = vld [vmem:[#allocation29_spill] sm:$0xff] }
 0x23f   : > { %5681 = vst [vmem:[#allocation60_spill] sm:$0xff] %v4856_v21 }
 0x240   : > { %3442 = vst [vmem:[%s4768_s11 + $0x48] sm:$0xff] %v1558_v20  ;;  %1886 = vmatmul.f32.gmra.mxu2 %v5683_v2  ;;  %v5688_v20 = vld [vmem:[#allocation38_spill] sm:$0xff] }
 0x241   : > { %v1561_v43 = vpop.f32.mrf.mxu3  ;;  %2089 = vmatmul.f32.gmra.mxu0 %v5636_v11 }
 0x243   : > { %v4858_v47 = vpop.f32.mrf.mxu1  ;;  %v1479_v54 = vpop.f32.mrf.mxu2 }
 0x244   : > { %5682 = vst [vmem:[#allocation61_spill] sm:$0xff] %v4858_v47  ;;  %v1480_v37 = vadd.f32 %v1479_v54, %v4717_v14 }
 0x246   : > { %2001 = vmatmul.f32.gmra.mxu3 %v5684_v25  ;;  %2175 = vmatmul.f32.gmra.mxu1 %v5641_v9  ;;  %v4866_v26 = vpop.f32.mrf.mxu0  ;;  %v1562_v21 = vadd.f32 %v1561_v43, %v1480_v37  ;;  %v5691_v43 = vld [vmem:[#allocation34_spill] sm:$0xff] }
 0x247   : > { %5685 = vst [vmem:[#allocation62_spill] sm:$0xff] %v4866_v26 }
 0x248   : > { %3443 = vst [vmem:[%s4768_s11 + $0x50] sm:$0xff] %v1562_v21  ;;  %1891 = vmatmul.f32.gmra.mxu2 %v5687_v10  ;;  %v5692_v21 = vld [vmem:[#allocation40_spill] sm:$0xff] }
 0x249   : > { %v1565_v30 = vpop.f32.mrf.mxu3  ;;  %2093 = vmatmul.f32.gmra.mxu0 %v5641_v9 }
 0x24b   : > { %v4868_v19 = vpop.f32.mrf.mxu1  ;;  %v1483_v47 = vpop.f32.mrf.mxu2 }
 0x24c   : > { %5686 = vst [vmem:[#allocation16_spill] sm:$0xff] %v4868_v19  ;;  %v1484_v25 = vadd.f32 %v1483_v47, %v4723_v55 }
 0x24e   : > { %2007 = vmatmul.f32.gmra.mxu3 %v5688_v20  ;;  %2179 = vmatmul.f32.gmra.mxu1 %v5646_v62  ;;  %v4876_v54 = vpop.f32.mrf.mxu0  ;;  %v1566_v26 = vadd.f32 %v1565_v30, %v1484_v25  ;;  %v5695_v25 = vld [vmem:[#allocation45_spill] sm:$0xff] }
 0x24f   : > { %5689 = vst [vmem:[#allocation63_spill] sm:$0xff] %v4876_v54 }
 0x250   : > { %3444 = vst [vmem:[%s4768_s11 + $0x58] sm:$0xff] %v1566_v26  ;;  %1896 = vmatmul.f32.gmra.mxu2 %v5691_v43 }
 0x251   : > { %v1569_v14 = vpop.f32.mrf.mxu3  ;;  %2097 = vmatmul.f32.gmra.mxu0 %v5646_v62 }
 0x253   : > { %v4878_v37 = vpop.f32.mrf.mxu1  ;;  %v1487_v19 = vpop.f32.mrf.mxu2 }
 0x254   : > { %5690 = vst [vmem:[#allocation64_spill] sm:$0xff] %v4878_v37  ;;  %v1488_v20 = vadd.f32 %v1487_v19, %v4732_v48  ;;  %v312_v19 = vld [vmem:[%s5576_s1 + $0x20] sm:$0xff] }
 0x256   : > { %2013 = vmatmul.f32.gmra.mxu3 %v5692_v21  ;;  %2183 = vmatmul.f32.gmra.mxu1 %v5651_v44  ;;  %v4886_v47 = vpop.f32.mrf.mxu0  ;;  %v1570_v10 = vadd.f32 %v1569_v14, %v1488_v20  ;;  %v2821_v14 = vand.u32 4294901760, %v312_v19 }
 0x257   : > { %5693 = vst [vmem:[#allocation65_spill] sm:$0xff] %v4886_v47  ;;  %v5698_v47 = vld [vmem:[#allocation43_spill] sm:$0xff] }
 0x258   : > { %3445 = vst [vmem:[%s4768_s11 + $0x60] sm:$0xff] %v1570_v10  ;;  %1901 = vmatmul.f32.gmra.mxu2 %v5655_v3  ;;  %2822 = vmatpush.msra.mxu0 %v2821_v14  ;;  %v2968_v37 = vsub.f32 %v312_v19, %v2821_v14 }
 0x259   : > { %v1573_v55 = vpop.f32.mrf.mxu3  ;;  %2101 = vmatmul.f32.gmra.mxu0 %v5651_v44 }
 0x25b   : > { %v4888_v54 = vpop.f32.mrf.mxu1  ;;  %v1491_v30 = vpop.f32.mrf.mxu2 }
 0x25c   : > { %5694 = vst [vmem:[#allocation66_spill] sm:$0xff] %v4888_v54  ;;  %v1492_v26 = vadd.f32 %v1491_v30, %v4738_v8  ;;  %v5699_v8 = vld [vmem:[#allocation51_spill] sm:$0xff]  ;;  %v2969_v30 = vand.u32 4294901760, %v2968_v37 }
 0x25e   : > { %2019 = vmatmul.f32.gmra.mxu3 %v5695_v25  ;;  %2187 = vmatmul.f32.gmra.mxu1 %v4340_v40  ;;  %v4899_v20 = vpop.f32.mrf.mxu0  ;;  %v1574_v10 = vadd.f32 %v1573_v55, %v1492_v26  ;;  %v2970_v3 = vsub.f32 %v2968_v37, %v2969_v30 }
 0x25f   : > { %5696 = vst [vmem:[#allocation67_spill] sm:$0xff] %v4899_v20 }
 0x260   : > { %3446 = vst [vmem:[%s4768_s11 + $0x68] sm:$0xff] %v1574_v10  ;;  %1906 = vmatmul.f32.gmra.mxu2 %v5698_v47  ;;  %v5701_v47 = vld [vmem:[#allocation47_spill] sm:$0xff] }
 0x261   : > { %v1577_v48 = vpop.f32.mrf.mxu3  ;;  %2105 = vmatmul.f32.gmra.mxu0 %v4340_v40 }
 0x263   : > { %v4901_v54 = vpop.f32.mrf.mxu1  ;;  %v1495_v25 = vpop.f32.mrf.mxu2 }
 0x264   : > { %5697 = vst [vmem:[#allocation68_spill] sm:$0xff] %v4901_v54  ;;  %v1496_v20 = vadd.f32 %v1495_v25, %v4746_v38  ;;  %v2971_v54 = vand.u32 4294901760, %v2970_v3 }
 0x266   : > { %2025 = vmatmul.f32.gmra.mxu3 %v5699_v8  ;;  %2191 = vmatmul.f32.gmra.mxu1 %v4382_v35  ;;  %v4909_v26 = vpop.f32.mrf.mxu0  ;;  %v1578_v19 = vadd.f32 %v1577_v48, %v1496_v20 }
 0x267   : > { %5700 = vst [vmem:[#allocation69_spill] sm:$0xff] %v4909_v26  ;;  %2972 = vmatpush.msra.mxu1 %v2971_v54  ;;  %v5702_v54 = vld [vmem:[#allocation23_spill] sm:$0xff] }
 0x268   : > { %3447 = vst [vmem:[%s4768_s11 + $0x70] sm:$0xff] %v1578_v19  ;;  %1911 = vmatmul.f32.gmra.mxu2 %v5701_v47  ;;  %v1754_v19 = vadd.f32 %v4744_v61, %v4752_v22  ;;  %v1758_v61 = vadd.f32 %v4754_v52, %v4763_v6 }
 0x269   : > { %v1581_v55 = vpop.f32.mrf.mxu3  ;;  %2109 = vmatmul.f32.gmra.mxu0 %v4382_v35 }
 0x26b   : > { %v2132_v10 = vpop.f32.mrf.mxu1  ;;  %v1499_v38 = vpop.f32.mrf.mxu2 }
 0x26c   : > { %v1500_v25 = vadd.f32 %v1499_v38, %v4756_v58 }
 0x26e   : > { %2363 = vmatmul.f32.vlgmr.msrb.gmra.mxu3 %v4176_v16  ;;  %2546 = vmatmul.f32.vlgmr.msrb.gmra.mxu1 %v5663_v32  ;;  %v2050_v3 = vpop.f32.mrf.mxu0  ;;  %v1582_v48 = vadd.f32 %v1581_v55, %v1500_v25 }
 0x26f   : > { %3153 = vmatpush.msrb.mxu3 %v2821_v14  ;;  %3351 = vmatpush.msrb.mxu1 %v2821_v14 }
 0x270   : > { %3448 = vst [vmem:[%s4768_s11 + $0x78] sm:$0xff] %v1582_v48  ;;  %2217 = vmatmul.f32.vlgmr.msrb.gmra.mxu2 %v5702_v54  ;;  %v5703_v54 = vld [vmem:[#allocation27_spill] sm:$0xff]  ;;  %s3901_s11 = scalar_lea.hbm %s3900_s10, 128 }
 0x271   : > { %v1936_v26 = vpop.f32.mrf.mxu3  ;;  %2447 = vmatmul.f32.vlgmr.msrb.gmra.mxu0 %v5664_v7  ;;  %3055 = vmatpush.msrb.mxu2 %v2968_v37  ;;  %p3902_p11 = scmp.ne.s32.totalorder %s3900_s10, %s3901_s11  ;;  %p3907_p1 = scmp.lt.s32.totalorder %s3905_s0, %s3901_s11 }
 0x272   : > { %3269 = vmatpush.msrb.mxu0 %v2969_v30 }
 0x273   : > { %v2136_v20 = vpop.f32.mrf.mxu1  ;;  %v1837_v58 = vpop.f32.mrf.mxu2  ;;  %p3903_p12 = pnand %p3902_p11, %p4146_p5  ;;  %p3908_p2 = por %p3907_p1, %p3906_p0 }
 0x274   : > { %v1838_v14 = vadd.f32 %v1837_v58, %v1754_v19 }
 0x275   : > { %p3904_p13 = pneg %p3903_p12 }
 0x276   : > { %2367 = vmatmul.f32.gmra.mxu3 %v4192_v24  ;;  %2552 = vmatmul.f32.gmra.mxu1 %v4217_v33  ;;  %v2054_v55 = vpop.f32.mrf.mxu0  ;;  %v1937_v25 = vadd.f32 %v1936_v26, %v1838_v14 }
 0x277   : > { %p3909_p3 = pnand %p3908_p2, %p3904_p13 }
 0x278   : > { %v2051_v32 = vadd.f32 %v2050_v3, %v1937_v25  ;;  %2225 = vmatmul.f32.gmra.mxu2 %v5703_v54  ;;  %v5704_v25 = vld [vmem:[#allocation32_spill] sm:$0xff] }
 0x279   : > { %v1942_v38 = vpop.f32.mrf.mxu3  ;;  %2452 = vmatmul.f32.gmra.mxu0 %v4203_v27 }
 0x27a   : > { %v2133_v22 = vadd.f32 %v2132_v10, %v2051_v32  ;;  %v1762_v32 = vadd.f32 %v4765_v39, %v4776_v23  ;;  %v1766_v39 = vadd.f32 %v4778_v0, %v4786_v57  ;;  %v1770_v0 = vadd.f32 %v4788_v18, %v4796_v60  ;;  %v5708_v18 = vld [vmem:[#allocation14_spill] sm:$0xff] }
 0x27b   : > { %v2140_v48 = vpop.f32.mrf.mxu1  ;;  %v1842_v37 = vpop.f32.mrf.mxu2  ;;  %v1774_v60 = vadd.f32 %v5708_v18, %v4806_v15  ;;  %v5711_v15 = vld [vmem:[#allocation55_spill] sm:$0xff] }
 0x27c   : > { %3449 = vst [vmem:[%s4931_s14] sm:$0xff] %v2133_v22  ;;  %v1843_v30 = vadd.f32 %v1842_v37, %v1758_v61 }
 0x27e   : > { %2371 = vmatmul.f32.gmra.mxu3 %v4207_v29  ;;  %2558 = vmatmul.f32.gmra.mxu1 %v4253_v49  ;;  %v2058_v3 = vpop.f32.mrf.mxu0  ;;  %v1943_v19 = vadd.f32 %v1942_v38, %v1843_v30  ;;  %v5705_v30 = vld [vmem:[#allocation37_spill] sm:$0xff] }
 0x280   : > { %v2055_v14 = vadd.f32 %v2054_v55, %v1943_v19  ;;  %2233 = vmatmul.f32.gmra.mxu2 %v5704_v25 }
 0x281   : > { %v1948_v26 = vpop.f32.mrf.mxu3  ;;  %2457 = vmatmul.f32.gmra.mxu0 %v4236_v42 }
 0x282   : > { %v2137_v52 = vadd.f32 %v2136_v20, %v2055_v14 }
 0x283   : > { %v2144_v58 = vpop.f32.mrf.mxu1  ;;  %v1847_v6 = vpop.f32.mrf.mxu2 }
 0x284   : > { %3450 = vst [vmem:[%s4931_s14 + $0x8] sm:$0xff] %v2137_v52  ;;  %v1848_v10 = vadd.f32 %v1847_v6, %v1762_v32  ;;  %v5706_v6 = vld [vmem:[#allocation42_spill] sm:$0xff] }
 0x286   : > { %2375 = vmatmul.f32.gmra.mxu3 %v4243_v45  ;;  %2564 = vmatmul.f32.gmra.mxu1 %v4277_v59  ;;  %v2062_v38 = vpop.f32.mrf.mxu0  ;;  %v1949_v22 = vadd.f32 %v1948_v26, %v1848_v10 }
 0x288   : > { %v2059_v37 = vadd.f32 %v2058_v3, %v1949_v22  ;;  %2241 = vmatmul.f32.gmra.mxu2 %v5705_v30 }
 0x289   : > { %v1954_v61 = vpop.f32.mrf.mxu3  ;;  %2462 = vmatmul.f32.gmra.mxu0 %v4261_v53 }
 0x28a   : > { %v2141_v23 = vadd.f32 %v2140_v48, %v2059_v37 }
 0x28b   : > { %v2148_v55 = vpop.f32.mrf.mxu1  ;;  %v1852_v20 = vpop.f32.mrf.mxu2 }
 0x28c   : > { %3451 = vst [vmem:[%s4931_s14 + $0x10] sm:$0xff] %v2141_v23  ;;  %v1853_v19 = vadd.f32 %v1852_v20, %v1766_v39  ;;  %v5707_v23 = vld [vmem:[#allocation46_spill] sm:$0xff] }
 0x28e   : > { %2379 = vmatmul.f32.gmra.mxu3 %v4285_v63  ;;  %2570 = vmatmul.f32.gmra.mxu1 %v4315_v12  ;;  %v2066_v26 = vpop.f32.mrf.mxu0  ;;  %v1955_v32 = vadd.f32 %v1954_v61, %v1853_v19 }
 0x290   : > { %v2063_v52 = vadd.f32 %v2062_v38, %v1955_v32  ;;  %2249 = vmatmul.f32.gmra.mxu2 %v5706_v6 }
 0x291   : > { %v1960_v14 = vpop.f32.mrf.mxu3  ;;  %2467 = vmatmul.f32.gmra.mxu0 %v4299_v5 }
 0x292   : > { %v2145_v57 = vadd.f32 %v2144_v58, %v2063_v52 }
 0x293   : > { %v2152_v3 = vpop.f32.mrf.mxu1  ;;  %v1857_v48 = vpop.f32.mrf.mxu2 }
 0x294   : > { %3452 = vst [vmem:[%s4931_s14 + $0x18] sm:$0xff] %v2145_v57  ;;  %v1858_v10 = vadd.f32 %v1857_v48, %v1770_v0  ;;  %v5709_v57 = vld [vmem:[#allocation50_spill] sm:$0xff]  ;;  %v5710_v48 = vld [vmem:[#allocation20_spill] sm:$0xff] }
 0x296   : > { %2383 = vmatmul.f32.gmra.mxu3 %v4317_v13  ;;  %2576 = vmatmul.f32.gmra.mxu1 %v4347_v50  ;;  %v2070_v61 = vpop.f32.mrf.mxu0  ;;  %v1961_v37 = vadd.f32 %v1960_v14, %v1858_v10 }
 0x298   : > { %v2067_v39 = vadd.f32 %v2066_v26, %v1961_v37  ;;  %2257 = vmatmul.f32.gmra.mxu2 %v5707_v23 }
 0x299   : > { %v1966_v22 = vpop.f32.mrf.mxu3  ;;  %2472 = vmatmul.f32.gmra.mxu0 %v4331_v31 }
 0x29a   : > { %v2149_v58 = vadd.f32 %v2148_v55, %v2067_v39  ;;  %v1778_v55 = vadd.f32 %v5711_v15, %v5710_v48  ;;  %v5715_v48 = vld [vmem:[#allocation56_spill] sm:$0xff] }
 0x29b   : > { %v2156_v38 = vpop.f32.mrf.mxu1  ;;  %v1862_v20 = vpop.f32.mrf.mxu2 }
 0x29c   : > { %3453 = vst [vmem:[%s4931_s14 + $0x20] sm:$0xff] %v2149_v58  ;;  %v1863_v19 = vadd.f32 %v1862_v20, %v1774_v60  ;;  %v5712_v20 = vld [vmem:[#allocation54_spill] sm:$0xff] }
 0x29e   : > { %2387 = vmatmul.f32.gmra.mxu3 %v4349_v51  ;;  %2582 = vmatmul.f32.gmra.mxu1 %v4380_v34  ;;  %v2074_v14 = vpop.f32.mrf.mxu0  ;;  %v1967_v52 = vadd.f32 %v1966_v22, %v1863_v19  ;;  %v5713_v19 = vld [vmem:[#allocation18_spill] sm:$0xff] }
 0x2a0   : > { %v2071_v0 = vadd.f32 %v2070_v61, %v1967_v52  ;;  %2265 = vmatmul.f32.gmra.mxu2 %v5709_v57  ;;  %v5714_v52 = vld [vmem:[#allocation25_spill] sm:$0xff] }
 0x2a1   : > { %v1972_v32 = vpop.f32.mrf.mxu3  ;;  %2477 = vmatmul.f32.gmra.mxu0 %v4363_v1 }
 0x2a2   : > { %v2153_v10 = vadd.f32 %v2152_v3, %v2071_v0  ;;  %v1782_v3 = vadd.f32 %v5715_v48, %v5714_v52  ;;  %v5719_v52 = vld [vmem:[#allocation57_spill] sm:$0xff] }
 0x2a3   : > { %v2160_v26 = vpop.f32.mrf.mxu1  ;;  %v1867_v37 = vpop.f32.mrf.mxu2 }
 0x2a4   : > { %3454 = vst [vmem:[%s4931_s14 + $0x28] sm:$0xff] %v2153_v10  ;;  %v1868_v39 = vadd.f32 %v1867_v37, %v1778_v55 }
 0x2a6   : > { %2391 = vmatmul.f32.gmra.mxu3 %v4384_v41  ;;  %2588 = vmatmul.f32.gmra.mxu1 %v4408_v36  ;;  %v2078_v22 = vpop.f32.mrf.mxu0  ;;  %v1973_v60 = vadd.f32 %v1972_v32, %v1868_v39  ;;  %v5731_v36 = vld [vmem:[#allocation62_spill] sm:$0xff] }
 0x2a8   : > { %v2075_v58 = vadd.f32 %v2074_v14, %v1973_v60  ;;  %2273 = vmatmul.f32.gmra.mxu2 %v5712_v20  ;;  %v5716_v60 = vld [vmem:[#allocation22_spill] sm:$0xff] }
 0x2a9   : > { %v1978_v18 = vpop.f32.mrf.mxu3  ;;  %2482 = vmatmul.f32.gmra.mxu0 %v5671_v46  ;;  %v5718_v46 = vld [vmem:[#allocation33_spill] sm:$0xff] }
 0x2aa   : > { %v2157_v0 = vadd.f32 %v2156_v38, %v2075_v58  ;;  %v1786_v38 = vadd.f32 %v5719_v52, %v5718_v46  ;;  %v5723_v46 = vld [vmem:[#allocation58_spill] sm:$0xff] }
 0x2ab   : > { %v2164_v61 = vpop.f32.mrf.mxu1  ;;  %v1872_v15 = vpop.f32.mrf.mxu2 }
 0x2ac   : > { %3455 = vst [vmem:[%s4931_s14 + $0x30] sm:$0xff] %v2157_v0  ;;  %v1873_v55 = vadd.f32 %v1872_v15, %v1782_v3 }
 0x2ae   : > { %2395 = vmatmul.f32.gmra.mxu3 %v5628_v28  ;;  %2594 = vmatmul.f32.gmra.mxu1 %v5713_v19  ;;  %v2082_v32 = vpop.f32.mrf.mxu0  ;;  %v1979_v37 = vadd.f32 %v1978_v18, %v1873_v55  ;;  %v5717_v19 = vld [vmem:[#allocation21_spill] sm:$0xff] }
 0x2b0   : > { %v2079_v39 = vadd.f32 %v2078_v22, %v1979_v37  ;;  %2281 = vmatmul.f32.gmra.mxu2 %v5716_v60  ;;  %v5720_v37 = vld [vmem:[#allocation26_spill] sm:$0xff] }
 0x2b1   : > { %v1984_v10 = vpop.f32.mrf.mxu3  ;;  %2487 = vmatmul.f32.gmra.mxu0 %v5675_v56  ;;  %v5722_v56 = vld [vmem:[#allocation36_spill] sm:$0xff] }
 0x2b2   : > { %v2161_v58 = vadd.f32 %v2160_v26, %v2079_v39  ;;  %v1790_v26 = vadd.f32 %v5723_v46, %v5722_v56  ;;  %v5727_v56 = vld [vmem:[#allocation59_spill] sm:$0xff] }
 0x2b3   : > { %v2168_v14 = vpop.f32.mrf.mxu1  ;;  %v1877_v48 = vpop.f32.mrf.mxu2 }
 0x2b4   : > { %3456 = vst [vmem:[%s4931_s14 + $0x38] sm:$0xff] %v2161_v58  ;;  %v1878_v3 = vadd.f32 %v1877_v48, %v1786_v38 }
 0x2b6   : > { %2399 = vmatmul.f32.gmra.mxu3 %v4178_v17  ;;  %2600 = vmatmul.f32.gmra.mxu1 %v5717_v19  ;;  %v2086_v18 = vpop.f32.mrf.mxu0  ;;  %v1985_v15 = vadd.f32 %v1984_v10, %v1878_v3  ;;  %v5721_v19 = vld [vmem:[#allocation28_spill] sm:$0xff] }
 0x2b8   : > { %v2083_v55 = vadd.f32 %v2082_v32, %v1985_v15  ;;  %2289 = vmatmul.f32.gmra.mxu2 %v5720_v37  ;;  %v5724_v15 = vld [vmem:[#allocation31_spill] sm:$0xff] }
 0x2b9   : > { %v1990_v0 = vpop.f32.mrf.mxu3  ;;  %2492 = vmatmul.f32.gmra.mxu0 %v5679_v4  ;;  %v5726_v4 = vld [vmem:[#allocation60_spill] sm:$0xff] }
 0x2ba   : > { %v2165_v39 = vadd.f32 %v2164_v61, %v2083_v55  ;;  %v1794_v61 = vadd.f32 %v5727_v56, %v5726_v4  ;;  %v5732_v4 = vld [vmem:[#allocation61_spill] sm:$0xff] }
 0x2bb   : > { %v2172_v22 = vpop.f32.mrf.mxu1  ;;  %v1882_v52 = vpop.f32.mrf.mxu2 }
 0x2bc   : > { %3457 = vst [vmem:[%s4931_s14 + $0x40] sm:$0xff] %v2165_v39  ;;  %v1883_v38 = vadd.f32 %v1882_v52, %v1790_v26 }
 0x2be   : > { %2403 = vmatmul.f32.gmra.mxu3 %v5636_v11  ;;  %2606 = vmatmul.f32.gmra.mxu1 %v5721_v19  ;;  %v2090_v10 = vpop.f32.mrf.mxu0  ;;  %v1991_v48 = vadd.f32 %v1990_v0, %v1883_v38  ;;  %v5725_v19 = vld [vmem:[#allocation30_spill] sm:$0xff] }
 0x2c0   : > { %v2087_v3 = vadd.f32 %v2086_v18, %v1991_v48  ;;  %2297 = vmatmul.f32.gmra.mxu2 %v5724_v15  ;;  %v5728_v48 = vld [vmem:[#allocation35_spill] sm:$0xff] }
 0x2c1   : > { %v1996_v58 = vpop.f32.mrf.mxu3  ;;  %2497 = vmatmul.f32.gmra.mxu0 %v5683_v2  ;;  %v5729_v2 = vld [vmem:[#allocation29_spill] sm:$0xff] }
 0x2c2   : > { %v2169_v55 = vadd.f32 %v2168_v14, %v2087_v3  ;;  %v1798_v14 = vadd.f32 %v5732_v4, %v5731_v36  ;;  %v5735_v36 = vld [vmem:[#allocation16_spill] sm:$0xff] }
 0x2c3   : > { %v2176_v32 = vpop.f32.mrf.mxu1  ;;  %v1887_v46 = vpop.f32.mrf.mxu2 }
 0x2c4   : > { %3458 = vst [vmem:[%s4931_s14 + $0x48] sm:$0xff] %v2169_v55  ;;  %v1888_v26 = vadd.f32 %v1887_v46, %v1794_v61 }
 0x2c6   : > { %2407 = vmatmul.f32.gmra.mxu3 %v5641_v9  ;;  %2612 = vmatmul.f32.gmra.mxu1 %v5725_v19  ;;  %v2094_v0 = vpop.f32.mrf.mxu0  ;;  %v1997_v52 = vadd.f32 %v1996_v58, %v1888_v26  ;;  %v5730_v19 = vld [vmem:[#allocation38_spill] sm:$0xff] }
 0x2c8   : > { %v2091_v38 = vadd.f32 %v2090_v10, %v1997_v52  ;;  %2305 = vmatmul.f32.gmra.mxu2 %v5728_v48  ;;  %v5733_v52 = vld [vmem:[#allocation41_spill] sm:$0xff] }
 0x2c9   : > { %v2002_v39 = vpop.f32.mrf.mxu3  ;;  %2502 = vmatmul.f32.gmra.mxu0 %v5729_v2  ;;  %v5739_v2 = vld [vmem:[#allocation65_spill] sm:$0xff] }
 0x2ca   : > { %v2173_v3 = vadd.f32 %v2172_v22, %v2091_v38 }
 0x2cb   : > { %v2180_v18 = vpop.f32.mrf.mxu1  ;;  %v1892_v56 = vpop.f32.mrf.mxu2 }
 0x2cc   : > { %3459 = vst [vmem:[%s4931_s14 + $0x50] sm:$0xff] %v2173_v3  ;;  %v1893_v61 = vadd.f32 %v1892_v56, %v1798_v14 }
 0x2ce   : > { %2411 = vmatmul.f32.gmra.mxu3 %v5646_v62  ;;  %2618 = vmatmul.f32.gmra.mxu1 %v5730_v19  ;;  %v2098_v58 = vpop.f32.mrf.mxu0  ;;  %v2003_v46 = vadd.f32 %v2002_v39, %v1893_v61  ;;  %v5734_v19 = vld [vmem:[#allocation63_spill] sm:$0xff] }
 0x2cf   : > { %v1802_v22 = vadd.f32 %v5735_v36, %v5734_v19  ;;  %v5740_v19 = vld [vmem:[#allocation64_spill] sm:$0xff] }
 0x2d0   : > { %v2095_v26 = vadd.f32 %v2094_v0, %v2003_v46  ;;  %2313 = vmatmul.f32.gmra.mxu2 %v5733_v52  ;;  %v5736_v46 = vld [vmem:[#allocation44_spill] sm:$0xff] }
 0x2d1   : > { %v2008_v55 = vpop.f32.mrf.mxu3  ;;  %2507 = vmatmul.f32.gmra.mxu0 %v5691_v43  ;;  %v5737_v43 = vld [vmem:[#allocation39_spill] sm:$0xff] }
 0x2d2   : > { %v2177_v38 = vadd.f32 %v2176_v32, %v2095_v26  ;;  %v1806_v32 = vadd.f32 %v5740_v19, %v5739_v2  ;;  %v5744_v2 = vld [vmem:[#allocation66_spill] sm:$0xff] }
 0x2d3   : > { %v2184_v10 = vpop.f32.mrf.mxu1  ;;  %v1897_v4 = vpop.f32.mrf.mxu2 }
 0x2d4   : > { %3460 = vst [vmem:[%s4931_s14 + $0x58] sm:$0xff] %v2177_v38  ;;  %v1898_v14 = vadd.f32 %v1897_v4, %v1802_v22 }
 0x2d6   : > { %2415 = vmatmul.f32.gmra.mxu3 %v5651_v44  ;;  %2624 = vmatmul.f32.gmra.mxu1 %v5692_v21  ;;  %v2102_v39 = vpop.f32.mrf.mxu0  ;;  %v2009_v56 = vadd.f32 %v2008_v55, %v1898_v14  ;;  %v5738_v21 = vld [vmem:[#allocation45_spill] sm:$0xff] }
 0x2d8   : > { %v2099_v61 = vadd.f32 %v2098_v58, %v2009_v56  ;;  %2321 = vmatmul.f32.gmra.mxu2 %v5736_v46  ;;  %v5741_v56 = vld [vmem:[#allocation49_spill] sm:$0xff] }
 0x2d9   : > { %v2014_v3 = vpop.f32.mrf.mxu3  ;;  %2512 = vmatmul.f32.gmra.mxu0 %v5737_v43  ;;  %v5742_v43 = vld [vmem:[#allocation43_spill] sm:$0xff] }
 0x2da   : > { %v2181_v26 = vadd.f32 %v2180_v18, %v2099_v61 }
 0x2db   : > { %v2188_v0 = vpop.f32.mrf.mxu1  ;;  %v1902_v36 = vpop.f32.mrf.mxu2 }
 0x2dc   : > { %3461 = vst [vmem:[%s4931_s14 + $0x60] sm:$0xff] %v2181_v26  ;;  %v1903_v22 = vadd.f32 %v1902_v36, %v1806_v32 }
 0x2de   : > { %2419 = vmatmul.f32.gmra.mxu3 %v4340_v40  ;;  %2630 = vmatmul.f32.gmra.mxu1 %v5738_v21  ;;  %v2106_v55 = vpop.f32.mrf.mxu0  ;;  %v2015_v4 = vadd.f32 %v2014_v3, %v1903_v22  ;;  %v5743_v21 = vld [vmem:[#allocation67_spill] sm:$0xff] }
 0x2df   : > { %v1810_v18 = vadd.f32 %v5744_v2, %v5743_v21  ;;  %v5747_v21 = vld [vmem:[#allocation68_spill] sm:$0xff] }
 0x2e0   : > { %v2103_v14 = vadd.f32 %v2102_v39, %v2015_v4  ;;  %2329 = vmatmul.f32.gmra.mxu2 %v5741_v56  ;;  %v5745_v4 = vld [vmem:[#allocation53_spill] sm:$0xff] }
 0x2e1   : > { %v2020_v38 = vpop.f32.mrf.mxu3  ;;  %2517 = vmatmul.f32.gmra.mxu0 %v5742_v43 }
 0x2e2   : > { %v2185_v61 = vadd.f32 %v2184_v10, %v2103_v14 }
 0x2e3   : > { %v2192_v58 = vpop.f32.mrf.mxu1  ;;  %v1907_v19 = vpop.f32.mrf.mxu2 }
 0x2e4   : > { %3462 = vst [vmem:[%s4931_s14 + $0x68] sm:$0xff] %v2185_v61  ;;  %v1908_v32 = vadd.f32 %v1907_v19, %v1810_v18 }
 0x2e6   : > { %2423 = vmatmul.f32.gmra.mxu3 %v4382_v35  ;;  %2636 = vmatmul.f32.gmra.mxu1 %v5699_v8  ;;  %v2110_v3 = vpop.f32.mrf.mxu0  ;;  %v2021_v36 = vadd.f32 %v2020_v38, %v1908_v32  ;;  %v5746_v8 = vld [vmem:[#allocation69_spill] sm:$0xff] }
 0x2e7   : > { %v1814_v10 = vadd.f32 %v5747_v21, %v5746_v8 }
 0x2e8   : > { %v2107_v22 = vadd.f32 %v2106_v55, %v2021_v36  ;;  %2337 = vmatmul.f32.gmra.mxu2 %v5745_v4  ;;  %v5748_v36 = vld [vmem:[#allocation23_spill] sm:$0xff] }
 0x2e9   : > { %v2026_v26 = vpop.f32.mrf.mxu3  ;;  %2522 = vmatmul.f32.gmra.mxu0 %v5701_v47 }
 0x2ea   : > { %v2189_v14 = vadd.f32 %v2188_v0, %v2107_v22 }
 0x2eb   : > { %v2547_v39 = vpop.f32.mrf.mxu1  ;;  %v1912_v2 = vpop.f32.mrf.mxu2 }
 0x2ec   : > { %3463 = vst [vmem:[%s4931_s14 + $0x70] sm:$0xff] %v2189_v14  ;;  %v1913_v18 = vadd.f32 %v1912_v2, %v1814_v10 }
 0x2ee   : > { %2742 = vmatmul.f32.vlgmr.msra.gmra.mxu3 %v4176_v16  ;;  %2974 = vmatmul.f32.vlgmr.msra.gmra.mxu1 %v4176_v16  ;;  %v2448_v38 = vpop.f32.mrf.mxu0  ;;  %v2027_v19 = vadd.f32 %v2026_v26, %v1913_v18 }
 0x2f0   : > { %v2111_v32 = vadd.f32 %v2110_v3, %v2027_v19  ;;  %2660 = vmatmul.f32.vlgmr.msra.gmra.mxu2 %v4176_v16 }
 0x2f1   : > { %v2364_v61 = vpop.f32.mrf.mxu3  ;;  %2828 = vmatmul.f32.vlgmr.msra.gmra.mxu0 %v5748_v36 }
 0x2f2   : > { %v2193_v47 = vadd.f32 %v2192_v58, %v2111_v32 }
 0x2f3   : > { %v2553_v55 = vpop.f32.mrf.mxu1  ;;  %v2218_v8 = vpop.f32.mrf.mxu2 }
 0x2f4   : > { %3464 = vst [vmem:[%s4931_s14 + $0x78] sm:$0xff] %v2193_v47  ;;  %v2365_v0 = vadd.f32 %v2364_v61, %v2218_v8 }
 0x2f6   : > { %2746 = vmatmul.f32.gmra.mxu3 %v4192_v24  ;;  %2978 = vmatmul.f32.gmra.mxu1 %v4192_v24  ;;  %v2453_v21 = vpop.f32.mrf.mxu0  ;;  %v2449_v10 = vadd.f32 %v2448_v38, %v2365_v0 }
 0x2f8   : > { %v5037_v2 = vadd.f32 %v2547_v39, %v2449_v10  ;;  %2664 = vmatmul.f32.gmra.mxu2 %v4192_v24 }
 0x2f9   : > { %v2368_v22 = vpop.f32.mrf.mxu3  ;;  %2836 = vmatmul.f32.gmra.mxu0 %v5703_v54 }
 0x2fb   : > { %v2559_v14 = vpop.f32.mrf.mxu1  ;;  %v2226_v26 = vpop.f32.mrf.mxu2 }
 0x2fc   : > { %v2369_v3 = vadd.f32 %v2368_v22, %v2226_v26 }
 0x2fe   : > { %2750 = vmatmul.f32.gmra.mxu3 %v4207_v29  ;;  %2982 = vmatmul.f32.gmra.mxu1 %v4207_v29  ;;  %v2458_v18 = vpop.f32.mrf.mxu0  ;;  %v2454_v47 = vadd.f32 %v2453_v21, %v2369_v3 }
 0x300   : > { %v5043_v19 = vadd.f32 %v2553_v55, %v2454_v47  ;;  %2668 = vmatmul.f32.gmra.mxu2 %v4207_v29 }
 0x301   : > { %v2372_v58 = vpop.f32.mrf.mxu3  ;;  %2844 = vmatmul.f32.gmra.mxu0 %v5704_v25 }
 0x303   : > { %v2565_v61 = vpop.f32.mrf.mxu1  ;;  %v2234_v54 = vpop.f32.mrf.mxu2 }
 0x304   : > { %v2373_v39 = vadd.f32 %v2372_v58, %v2234_v54 }
 0x306   : > { %2754 = vmatmul.f32.gmra.mxu3 %v4243_v45  ;;  %2986 = vmatmul.f32.gmra.mxu1 %v4243_v45  ;;  %v2463_v32 = vpop.f32.mrf.mxu0  ;;  %v2459_v36 = vadd.f32 %v2458_v18, %v2373_v39 }
 0x308   : > { %v5049_v0 = vadd.f32 %v2559_v14, %v2459_v36  ;;  %2672 = vmatmul.f32.gmra.mxu2 %v4243_v45 }
 0x309   : > { %v2376_v38 = vpop.f32.mrf.mxu3  ;;  %2852 = vmatmul.f32.gmra.mxu0 %v5705_v30 }
 0x30b   : > { %v2571_v8 = vpop.f32.mrf.mxu1  ;;  %v2242_v25 = vpop.f32.mrf.mxu2 }
 0x30c   : > { %v2377_v55 = vadd.f32 %v2376_v38, %v2242_v25 }
 0x30e   : > { %2758 = vmatmul.f32.gmra.mxu3 %v4285_v63  ;;  %2990 = vmatmul.f32.gmra.mxu1 %v4285_v63  ;;  %v2468_v21 = vpop.f32.mrf.mxu0  ;;  %v2464_v10 = vadd.f32 %v2463_v32, %v2377_v55 }
 0x310   : > { %v5055_v3 = vadd.f32 %v2565_v61, %v2464_v10  ;;  %2676 = vmatmul.f32.gmra.mxu2 %v4285_v63 }
 0x311   : > { %v2380_v22 = vpop.f32.mrf.mxu3  ;;  %2860 = vmatmul.f32.gmra.mxu0 %v5706_v6 }
 0x313   : > { %v2577_v26 = vpop.f32.mrf.mxu1  ;;  %v2250_v30 = vpop.f32.mrf.mxu2 }
 0x314   : > { %v2381_v14 = vadd.f32 %v2380_v22, %v2250_v30 }
 0x316   : > { %2762 = vmatmul.f32.gmra.mxu3 %v4317_v13  ;;  %2994 = vmatmul.f32.gmra.mxu1 %v4317_v13  ;;  %v2473_v18 = vpop.f32.mrf.mxu0  ;;  %v2469_v47 = vadd.f32 %v2468_v21, %v2381_v14 }
 0x318   : > { %v5061_v39 = vadd.f32 %v2571_v8, %v2469_v47  ;;  %2680 = vmatmul.f32.gmra.mxu2 %v4317_v13 }
 0x319   : > { %v2384_v58 = vpop.f32.mrf.mxu3  ;;  %2868 = vmatmul.f32.gmra.mxu0 %v5707_v23 }
 0x31b   : > { %v2583_v54 = vpop.f32.mrf.mxu1  ;;  %v2258_v6 = vpop.f32.mrf.mxu2 }
 0x31c   : > { %v2385_v61 = vadd.f32 %v2384_v58, %v2258_v6 }
 0x31e   : > { %2766 = vmatmul.f32.gmra.mxu3 %v4349_v51  ;;  %2998 = vmatmul.f32.gmra.mxu1 %v4349_v51  ;;  %v2478_v32 = vpop.f32.mrf.mxu0  ;;  %v2474_v36 = vadd.f32 %v2473_v18, %v2385_v61 }
 0x320   : > { %v5067_v55 = vadd.f32 %v2577_v26, %v2474_v36  ;;  %2684 = vmatmul.f32.gmra.mxu2 %v4349_v51 }
 0x321   : > { %v2388_v38 = vpop.f32.mrf.mxu3  ;;  %2876 = vmatmul.f32.gmra.mxu0 %v5709_v57 }
 0x323   : > { %v2589_v25 = vpop.f32.mrf.mxu1  ;;  %v2266_v23 = vpop.f32.mrf.mxu2 }
 0x324   : > { %v2389_v8 = vadd.f32 %v2388_v38, %v2266_v23 }
 0x326   : > { %2770 = vmatmul.f32.gmra.mxu3 %v4384_v41  ;;  %3002 = vmatmul.f32.gmra.mxu1 %v4384_v41  ;;  %v2483_v21 = vpop.f32.mrf.mxu0  ;;  %v2479_v10 = vadd.f32 %v2478_v32, %v2389_v8 }
 0x328   : > { %v5073_v14 = vadd.f32 %v2583_v54, %v2479_v10  ;;  %2688 = vmatmul.f32.gmra.mxu2 %v4384_v41 }
 0x329   : > { %v2392_v22 = vpop.f32.mrf.mxu3  ;;  %2884 = vmatmul.f32.gmra.mxu0 %v5712_v20 }
 0x32b   : > { %v2595_v30 = vpop.f32.mrf.mxu1  ;;  %v2274_v57 = vpop.f32.mrf.mxu2 }
 0x32c   : > { %v2393_v26 = vadd.f32 %v2392_v22, %v2274_v57 }
 0x32e   : > { %2774 = vmatmul.f32.gmra.mxu3 %v5628_v28  ;;  %3006 = vmatmul.f32.gmra.mxu1 %v5628_v28  ;;  %v2488_v18 = vpop.f32.mrf.mxu0  ;;  %v2484_v47 = vadd.f32 %v2483_v21, %v2393_v26 }
 0x330   : > { %v5079_v61 = vadd.f32 %v2589_v25, %v2484_v47  ;;  %2692 = vmatmul.f32.gmra.mxu2 %v5628_v28 }
 0x331   : > { %v2396_v58 = vpop.f32.mrf.mxu3  ;;  %2892 = vmatmul.f32.gmra.mxu0 %v5716_v60 }
 0x333   : > { %v2601_v6 = vpop.f32.mrf.mxu1  ;;  %v2282_v20 = vpop.f32.mrf.mxu2 }
 0x334   : > { %v2397_v54 = vadd.f32 %v2396_v58, %v2282_v20 }
 0x336   : > { %2778 = vmatmul.f32.gmra.mxu3 %v4178_v17  ;;  %3010 = vmatmul.f32.gmra.mxu1 %v4178_v17  ;;  %v2493_v32 = vpop.f32.mrf.mxu0  ;;  %v2489_v36 = vadd.f32 %v2488_v18, %v2397_v54 }
 0x338   : > { %v5085_v8 = vadd.f32 %v2595_v30, %v2489_v36  ;;  %2696 = vmatmul.f32.gmra.mxu2 %v4178_v17 }
 0x339   : > { %v2400_v38 = vpop.f32.mrf.mxu3  ;;  %2900 = vmatmul.f32.gmra.mxu0 %v5720_v37 }
 0x33b   : > { %v2607_v23 = vpop.f32.mrf.mxu1  ;;  %v2290_v60 = vpop.f32.mrf.mxu2 }
 0x33c   : > { %v2401_v25 = vadd.f32 %v2400_v38, %v2290_v60 }
 0x33e   : > { %2782 = vmatmul.f32.gmra.mxu3 %v5636_v11  ;;  %3014 = vmatmul.f32.gmra.mxu1 %v5636_v11  ;;  %v2498_v21 = vpop.f32.mrf.mxu0  ;;  %v2494_v10 = vadd.f32 %v2493_v32, %v2401_v25 }
 0x340   : > { %v5091_v26 = vadd.f32 %v2601_v6, %v2494_v10  ;;  %2700 = vmatmul.f32.gmra.mxu2 %v5636_v11 }
 0x341   : > { %v2404_v22 = vpop.f32.mrf.mxu3  ;;  %2908 = vmatmul.f32.gmra.mxu0 %v5724_v15 }
 0x343   : > { %v2613_v57 = vpop.f32.mrf.mxu1  ;;  %v2298_v37 = vpop.f32.mrf.mxu2 }
 0x344   : > { %v2405_v30 = vadd.f32 %v2404_v22, %v2298_v37 }
 0x346   : > { %2786 = vmatmul.f32.gmra.mxu3 %v5641_v9  ;;  %3018 = vmatmul.f32.gmra.mxu1 %v5641_v9  ;;  %v2503_v18 = vpop.f32.mrf.mxu0  ;;  %v2499_v47 = vadd.f32 %v2498_v21, %v2405_v30 }
 0x348   : > { %v5097_v54 = vadd.f32 %v2607_v23, %v2499_v47  ;;  %2704 = vmatmul.f32.gmra.mxu2 %v5641_v9 }
 0x349   : > { %v2408_v58 = vpop.f32.mrf.mxu3  ;;  %2916 = vmatmul.f32.gmra.mxu0 %v5728_v48 }
 0x34b   : > { %v2619_v20 = vpop.f32.mrf.mxu1  ;;  %v2306_v15 = vpop.f32.mrf.mxu2 }
 0x34c   : > { %v2409_v6 = vadd.f32 %v2408_v58, %v2306_v15 }
 0x34e   : > { %2790 = vmatmul.f32.gmra.mxu3 %v5646_v62  ;;  %3022 = vmatmul.f32.gmra.mxu1 %v5646_v62  ;;  %v2508_v32 = vpop.f32.mrf.mxu0  ;;  %v2504_v36 = vadd.f32 %v2503_v18, %v2409_v6 }
 0x350   : > { %v5103_v25 = vadd.f32 %v2613_v57, %v2504_v36  ;;  %2708 = vmatmul.f32.gmra.mxu2 %v5646_v62 }
 0x351   : > { %v2412_v38 = vpop.f32.mrf.mxu3  ;;  %2924 = vmatmul.f32.gmra.mxu0 %v5733_v52 }
 0x353   : > { %v2625_v60 = vpop.f32.mrf.mxu1  ;;  %v2314_v48 = vpop.f32.mrf.mxu2 }
 0x354   : > { %v2413_v23 = vadd.f32 %v2412_v38, %v2314_v48 }
 0x356   : > { %2794 = vmatmul.f32.gmra.mxu3 %v5651_v44  ;;  %3026 = vmatmul.f32.gmra.mxu1 %v5651_v44  ;;  %v2513_v21 = vpop.f32.mrf.mxu0  ;;  %v2509_v10 = vadd.f32 %v2508_v32, %v2413_v23 }
 0x358   : > { %v5109_v30 = vadd.f32 %v2619_v20, %v2509_v10  ;;  %2712 = vmatmul.f32.gmra.mxu2 %v5651_v44 }
 0x359   : > { %v2416_v22 = vpop.f32.mrf.mxu3  ;;  %2932 = vmatmul.f32.gmra.mxu0 %v5736_v46 }
 0x35b   : > { %v2631_v37 = vpop.f32.mrf.mxu1  ;;  %v2322_v52 = vpop.f32.mrf.mxu2 }
 0x35c   : > { %v2417_v57 = vadd.f32 %v2416_v22, %v2322_v52 }
 0x35e   : > { %2798 = vmatmul.f32.gmra.mxu3 %v4340_v40  ;;  %3030 = vmatmul.f32.gmra.mxu1 %v4340_v40  ;;  %v2518_v18 = vpop.f32.mrf.mxu0  ;;  %v2514_v47 = vadd.f32 %v2513_v21, %v2417_v57 }
 0x360   : > { %v5115_v6 = vadd.f32 %v2625_v60, %v2514_v47  ;;  %2716 = vmatmul.f32.gmra.mxu2 %v4340_v40  ;;  %v5749_v60 = vld [vmem:[#allocation19_spill] sm:$0xff] }
 0x361   : > { %v2420_v58 = vpop.f32.mrf.mxu3  ;;  %2940 = vmatmul.f32.gmra.mxu0 %v5741_v56 }
 0x363   : > { %v2637_v15 = vpop.f32.mrf.mxu1  ;;  %v2330_v46 = vpop.f32.mrf.mxu2 }
 0x364   : > { %v2421_v20 = vadd.f32 %v2420_v58, %v2330_v46 }
 0x366   : > { %2802 = vmatmul.f32.gmra.mxu3 %v4382_v35  ;;  %3034 = vmatmul.f32.gmra.mxu1 %v4382_v35  ;;  %v2523_v32 = vpop.f32.mrf.mxu0  ;;  %v2519_v36 = vadd.f32 %v2518_v18, %v2421_v20 }
 0x368   : > { %v5123_v23 = vadd.f32 %v2631_v37, %v2519_v36  ;;  %2720 = vmatmul.f32.gmra.mxu2 %v4382_v35 }
 0x369   : > { %v2424_v38 = vpop.f32.mrf.mxu3  ;;  %2948 = vmatmul.f32.gmra.mxu0 %v5745_v4 }
 0x36b   : > { %v5121_v48 = vpop.f32.mrf.mxu1  ;;  %v2338_v56 = vpop.f32.mrf.mxu2 }
 0x36c   : > { %v2425_v22 = vadd.f32 %v2424_v38, %v2338_v56 }
 0x36e   : > { %3157 = vmatmul.f32.vlgmr.msrb.gmra.mxu3 %v5749_v60  ;;  %3353 = vmatmul.f32.vlgmr.msrb.gmra.mxu1 %v4176_v16  ;;  %v5129_v10 = vpop.f32.mrf.mxu0  ;;  %v2524_v52 = vadd.f32 %v2523_v32, %v2425_v22 }
 0x370   : > { %v5133_v58 = vadd.f32 %v2637_v15, %v2524_v52  ;;  %3058 = vmatmul.f32.vlgmr.msrb.gmra.mxu2 %v5664_v7 }
 0x371   : > { %v2743_v21 = vpop.f32.mrf.mxu3  ;;  %3271 = vmatmul.f32.vlgmr.msrb.gmra.mxu0 %v4176_v16 }
 0x373   : > { %v5131_v57 = vpop.f32.mrf.mxu1  ;;  %v2661_v4 = vpop.f32.mrf.mxu2 }
 0x374   : > { %v2662_v37 = vadd.f32 %v2661_v4, %v5037_v2 }
 0x376   : > { %3163 = vmatmul.f32.gmra.mxu3 %v4217_v33  ;;  %3357 = vmatmul.f32.gmra.mxu1 %v4192_v24  ;;  %v5140_v47 = vpop.f32.mrf.mxu0  ;;  %v2744_v46 = vadd.f32 %v2743_v21, %v2662_v37 }
 0x378   : > { %3465 = vst [vmem:[%s5145_s15] sm:$0xff] %v2744_v46  ;;  %3063 = vmatmul.f32.gmra.mxu2 %v4203_v27 }
 0x379   : > { %v2747_v18 = vpop.f32.mrf.mxu3  ;;  %3275 = vmatmul.f32.gmra.mxu0 %v4192_v24 }
 0x37b   : > { %v5142_v20 = vpop.f32.mrf.mxu1  ;;  %v2665_v16 = vpop.f32.mrf.mxu2 }
 0x37c   : > { %v2666_v33 = vadd.f32 %v2665_v16, %v5043_v19  ;;  %v5751_v16 = vld [vmem:[#allocation48_spill] sm:$0xff] }
 0x37e   : > { %3169 = vmatmul.f32.gmra.mxu3 %v4253_v49  ;;  %3361 = vmatmul.f32.gmra.mxu1 %v4207_v29  ;;  %v5153_v2 = vpop.f32.mrf.mxu0  ;;  %v2748_v15 = vadd.f32 %v2747_v18, %v2666_v33 }
 0x380   : > { %3466 = vst [vmem:[%s5145_s15 + $0x8] sm:$0xff] %v2748_v15  ;;  %3068 = vmatmul.f32.gmra.mxu2 %v4236_v42 }
 0x381   : > { %v2751_v7 = vpop.f32.mrf.mxu3  ;;  %3279 = vmatmul.f32.gmra.mxu0 %v4207_v29 }
 0x383   : > { %v5155_v38 = vpop.f32.mrf.mxu1  ;;  %v2669_v24 = vpop.f32.mrf.mxu2 }
 0x384   : > { %v2670_v27 = vadd.f32 %v2669_v24, %v5049_v0 }
 0x386   : > { %3175 = vmatmul.f32.gmra.mxu3 %v4277_v59  ;;  %3365 = vmatmul.f32.gmra.mxu1 %v4243_v45  ;;  %v5163_v19 = vpop.f32.mrf.mxu0  ;;  %v2752_v32 = vadd.f32 %v2751_v7, %v2670_v27 }
 0x388   : > { %3467 = vst [vmem:[%s5145_s15 + $0x10] sm:$0xff] %v2752_v32  ;;  %3073 = vmatmul.f32.gmra.mxu2 %v4261_v53 }
 0x389   : > { %v2755_v49 = vpop.f32.mrf.mxu3  ;;  %3283 = vmatmul.f32.gmra.mxu0 %v4243_v45 }
 0x38b   : > { %v5165_v36 = vpop.f32.mrf.mxu1  ;;  %v2673_v29 = vpop.f32.mrf.mxu2 }
 0x38c   : > { %v2674_v42 = vadd.f32 %v2673_v29, %v5055_v3 }
 0x38e   : > { %3181 = vmatmul.f32.gmra.mxu3 %v4315_v12  ;;  %3369 = vmatmul.f32.gmra.mxu1 %v4285_v63  ;;  %v5173_v0 = vpop.f32.mrf.mxu0  ;;  %v2756_v60 = vadd.f32 %v2755_v49, %v2674_v42  ;;  %v5753_v49 = vld [vmem:[#allocation15_spill] sm:$0xff] }
 0x390   : > { %3468 = vst [vmem:[%s5145_s15 + $0x18] sm:$0xff] %v2756_v60  ;;  %3078 = vmatmul.f32.gmra.mxu2 %v4299_v5 }
 0x391   : > { %v2759_v59 = vpop.f32.mrf.mxu3  ;;  %3287 = vmatmul.f32.gmra.mxu0 %v4285_v63 }
 0x393   : > { %v5175_v56 = vpop.f32.mrf.mxu1  ;;  %v2677_v45 = vpop.f32.mrf.mxu2 }
 0x394   : > { %v2678_v53 = vadd.f32 %v2677_v45, %v5061_v39 }
 0x396   : > { %3187 = vmatmul.f32.gmra.mxu3 %v4347_v50  ;;  %3373 = vmatmul.f32.gmra.mxu1 %v4317_v13  ;;  %v5183_v3 = vpop.f32.mrf.mxu0  ;;  %v2760_v22 = vadd.f32 %v2759_v59, %v2678_v53  ;;  %v5755_v53 = vld [vmem:[#allocation17_spill] sm:$0xff] }
 0x398   : > { %3469 = vst [vmem:[%s5145_s15 + $0x20] sm:$0xff] %v2760_v22  ;;  %3083 = vmatmul.f32.gmra.mxu2 %v4331_v31 }
 0x399   : > { %v2763_v12 = vpop.f32.mrf.mxu3  ;;  %3291 = vmatmul.f32.gmra.mxu0 %v4317_v13  ;;  %v5750_v13 = vld [vmem:[#allocation52_spill] sm:$0xff] }
 0x39b   : > { %v5185_v21 = vpop.f32.mrf.mxu1  ;;  %v2681_v63 = vpop.f32.mrf.mxu2 }
 0x39c   : > { %v2682_v5 = vadd.f32 %v2681_v63, %v5067_v55 }
 0x39e   : > { %3193 = vmatmul.f32.gmra.mxu3 %v4380_v34  ;;  %3377 = vmatmul.f32.gmra.mxu1 %v4349_v51  ;;  %v5193_v39 = vpop.f32.mrf.mxu0  ;;  %v2764_v52 = vadd.f32 %v2763_v12, %v2682_v5 }
 0x3a0   : > { %3470 = vst [vmem:[%s5145_s15 + $0x28] sm:$0xff] %v2764_v52  ;;  %3088 = vmatmul.f32.gmra.mxu2 %v4363_v1  ;;  %v5752_v1 = vld [vmem:[#allocation18_spill] sm:$0xff] }
 0x3a1   : > { %v2767_v50 = vpop.f32.mrf.mxu3  ;;  %3295 = vmatmul.f32.gmra.mxu0 %v4349_v51 }
 0x3a3   : > { %v5195_v4 = vpop.f32.mrf.mxu1  ;;  %v2685_v31 = vpop.f32.mrf.mxu2 }
 0x3a4   : > { %v2686_v34 = vadd.f32 %v2685_v31, %v5073_v14 }
 0x3a6   : > { %3199 = vmatmul.f32.gmra.mxu3 %v5750_v13  ;;  %3381 = vmatmul.f32.gmra.mxu1 %v4384_v41  ;;  %v5203_v37 = vpop.f32.mrf.mxu0  ;;  %v2768_v18 = vadd.f32 %v2767_v50, %v2686_v34  ;;  %v5757_v13 = vld [vmem:[#allocation24_spill] sm:$0xff] }
 0x3a8   : > { %3471 = vst [vmem:[%s5145_s15 + $0x30] sm:$0xff] %v2768_v18  ;;  %3093 = vmatmul.f32.gmra.mxu2 %v5751_v16 }
 0x3a9   : > { %v2771_v55 = vpop.f32.mrf.mxu3  ;;  %3299 = vmatmul.f32.gmra.mxu0 %v4384_v41  ;;  %v5754_v41 = vld [vmem:[#allocation21_spill] sm:$0xff] }
 0x3ab   : > { %v3007_v46 = vpop.f32.mrf.mxu1  ;;  %v2689_v51 = vpop.f32.mrf.mxu2 }
 0x3ac   : > { %v2690_v33 = vadd.f32 %v2689_v51, %v5079_v61 }
 0x3ae   : > { %3205 = vmatmul.f32.gmra.mxu3 %v5752_v1  ;;  %3385 = vmatmul.f32.gmra.mxu1 %v5628_v28  ;;  %v2893_v14 = vpop.f32.mrf.mxu0  ;;  %v2772_v15 = vadd.f32 %v2771_v55, %v2690_v33  ;;  %v5759_v1 = vld [vmem:[#allocation29_spill] sm:$0xff] }
 0x3af   : > { %v5211_v24 = vadd.f32 %v3007_v46, %v2893_v14 }
 0x3b0   : > { %3472 = vst [vmem:[%s5145_s15 + $0x38] sm:$0xff] %v2772_v15  ;;  %3098 = vmatmul.f32.gmra.mxu2 %v5753_v49  ;;  %v5761_v49 = vld [vmem:[#allocation34_spill] sm:$0xff] }
 0x3b1   : > { %v2775_v7 = vpop.f32.mrf.mxu3  ;;  %3303 = vmatmul.f32.gmra.mxu0 %v5628_v28  ;;  %v5756_v28 = vld [vmem:[#allocation28_spill] sm:$0xff] }
 0x3b3   : > { %v3011_v27 = vpop.f32.mrf.mxu1  ;;  %v2693_v32 = vpop.f32.mrf.mxu2 }
 0x3b4   : > { %v2694_v29 = vadd.f32 %v2693_v32, %v5085_v8 }
 0x3b6   : > { %3211 = vmatmul.f32.gmra.mxu3 %v5754_v41  ;;  %3389 = vmatmul.f32.gmra.mxu1 %v4178_v17  ;;  %v2901_v42 = vpop.f32.mrf.mxu0  ;;  %v2776_v59 = vadd.f32 %v2775_v7, %v2694_v29 }
 0x3b7   : > { %v5219_v60 = vadd.f32 %v3011_v27, %v2901_v42 }
 0x3b8   : > { %3473 = vst [vmem:[%s5145_s15 + $0x40] sm:$0xff] %v2776_v59  ;;  %3103 = vmatmul.f32.gmra.mxu2 %v5755_v53 }
 0x3b9   : > { %v2779_v61 = vpop.f32.mrf.mxu3  ;;  %3307 = vmatmul.f32.gmra.mxu0 %v4178_v17  ;;  %v5758_v17 = vld [vmem:[#allocation30_spill] sm:$0xff] }
 0x3bb   : > { %v3015_v45 = vpop.f32.mrf.mxu1  ;;  %v2697_v12 = vpop.f32.mrf.mxu2 }
 0x3bc   : > { %v2698_v22 = vadd.f32 %v2697_v12, %v5091_v26 }
 0x3be   : > { %3217 = vmatmul.f32.gmra.mxu3 %v5756_v28  ;;  %3393 = vmatmul.f32.gmra.mxu1 %v5636_v11  ;;  %v2909_v63 = vpop.f32.mrf.mxu0  ;;  %v2780_v5 = vadd.f32 %v2779_v61, %v2698_v22 }
 0x3bf   : > { %v5227_v50 = vadd.f32 %v3015_v45, %v2909_v63  ;;  %v5763_v45 = vld [vmem:[#allocation39_spill] sm:$0xff] }
 0x3c0   : > { %3474 = vst [vmem:[%s5145_s15 + $0x48] sm:$0xff] %v2780_v5  ;;  %3108 = vmatmul.f32.gmra.mxu2 %v5757_v13 }
 0x3c1   : > { %v2783_v8 = vpop.f32.mrf.mxu3  ;;  %3311 = vmatmul.f32.gmra.mxu0 %v5636_v11  ;;  %v5760_v11 = vld [vmem:[#allocation38_spill] sm:$0xff] }
 0x3c3   : > { %v3019_v52 = vpop.f32.mrf.mxu1  ;;  %v2701_v31 = vpop.f32.mrf.mxu2 }
 0x3c4   : > { %v2702_v34 = vadd.f32 %v2701_v31, %v5097_v54 }
 0x3c6   : > { %3223 = vmatmul.f32.gmra.mxu3 %v5758_v17  ;;  %3397 = vmatmul.f32.gmra.mxu1 %v5641_v9  ;;  %v2917_v55 = vpop.f32.mrf.mxu0  ;;  %v2784_v18 = vadd.f32 %v2783_v8, %v2702_v34 }
 0x3c7   : > { %v5235_v46 = vadd.f32 %v3019_v52, %v2917_v55 }
 0x3c8   : > { %3475 = vst [vmem:[%s5145_s15 + $0x50] sm:$0xff] %v2784_v18  ;;  %3113 = vmatmul.f32.gmra.mxu2 %v5759_v1 }
 0x3c9   : > { %v2787_v26 = vpop.f32.mrf.mxu3  ;;  %3315 = vmatmul.f32.gmra.mxu0 %v5641_v9  ;;  %v5762_v9 = vld [vmem:[#allocation40_spill] sm:$0xff] }
 0x3cb   : > { %v3023_v16 = vpop.f32.mrf.mxu1  ;;  %v2705_v51 = vpop.f32.mrf.mxu2 }
 0x3cc   : > { %v2706_v33 = vadd.f32 %v2705_v51, %v5103_v25 }
 0x3ce   : > { %3229 = vmatmul.f32.gmra.mxu3 %v5760_v11  ;;  %3401 = vmatmul.f32.gmra.mxu1 %v5646_v62  ;;  %v2925_v7 = vpop.f32.mrf.mxu0  ;;  %v2788_v14 = vadd.f32 %v2787_v26, %v2706_v33 }
 0x3cf   : > { %v5243_v15 = vadd.f32 %v3023_v16, %v2925_v7 }
 0x3d0   : > { %3476 = vst [vmem:[%s5145_s15 + $0x58] sm:$0xff] %v2788_v14  ;;  %3118 = vmatmul.f32.gmra.mxu2 %v5761_v49 }
 0x3d1   : > { %v2791_v54 = vpop.f32.mrf.mxu3  ;;  %3319 = vmatmul.f32.gmra.mxu0 %v5646_v62  ;;  %v5764_v62 = vld [vmem:[#allocation45_spill] sm:$0xff] }
 0x3d3   : > { %v3027_v27 = vpop.f32.mrf.mxu1  ;;  %v2709_v41 = vpop.f32.mrf.mxu2 }
 0x3d4   : > { %v2710_v32 = vadd.f32 %v2709_v41, %v5109_v30 }
 0x3d6   : > { %3235 = vmatmul.f32.gmra.mxu3 %v5762_v9  ;;  %3405 = vmatmul.f32.gmra.mxu1 %v5651_v44  ;;  %v2933_v29 = vpop.f32.mrf.mxu0  ;;  %v2792_v61 = vadd.f32 %v2791_v54, %v2710_v32 }
 0x3d7   : > { %v5251_v42 = vadd.f32 %v3027_v27, %v2933_v29 }
 0x3d8   : > { %3477 = vst [vmem:[%s5145_s15 + $0x60] sm:$0xff] %v2792_v61  ;;  %3123 = vmatmul.f32.gmra.mxu2 %v5763_v45 }
 0x3d9   : > { %v2795_v25 = vpop.f32.mrf.mxu3  ;;  %3323 = vmatmul.f32.gmra.mxu0 %v5651_v44  ;;  %v5765_v44 = vld [vmem:[#allocation51_spill] sm:$0xff] }
 0x3db   : > { %v3031_v59 = vpop.f32.mrf.mxu1  ;;  %v2713_v53 = vpop.f32.mrf.mxu2 }
 0x3dc   : > { %v2714_v28 = vadd.f32 %v2713_v53, %v5115_v6 }
 0x3de   : > { %3241 = vmatmul.f32.gmra.mxu3 %v5764_v62  ;;  %3409 = vmatmul.f32.gmra.mxu1 %v4340_v40  ;;  %v2941_v12 = vpop.f32.mrf.mxu0  ;;  %v2796_v22 = vadd.f32 %v2795_v25, %v2714_v28 }
 0x3df   : > { %v5259_v8 = vadd.f32 %v3031_v59, %v2941_v12 }
 0x3e0   : > { %3478 = vst [vmem:[%s5145_s15 + $0x68] sm:$0xff] %v2796_v22  ;;  %3128 = vmatmul.f32.gmra.mxu2 %v5742_v43  ;;  %v5766_v43 = vld [vmem:[#allocation47_spill] sm:$0xff] }
 0x3e1   : > { %v2799_v30 = vpop.f32.mrf.mxu3  ;;  %3327 = vmatmul.f32.gmra.mxu0 %v4340_v40 }
 0x3e3   : > { %v3035_v63 = vpop.f32.mrf.mxu1  ;;  %v2717_v5 = vpop.f32.mrf.mxu2 }
 0x3e4   : > { %v2718_v6 = vadd.f32 %v2717_v5, %v5123_v23 }
 0x3e6   : > { %3247 = vmatmul.f32.gmra.mxu3 %v5765_v44  ;;  %3413 = vmatmul.f32.gmra.mxu1 %v4382_v35  ;;  %v2949_v13 = vpop.f32.mrf.mxu0  ;;  %v2800_v17 = vadd.f32 %v2799_v30, %v2718_v6 }
 0x3e7   : > { %v5267_v31 = vadd.f32 %v3035_v63, %v2949_v13 }
 0x3e8   : > { %3479 = vst [vmem:[%s5145_s15 + $0x70] sm:$0xff] %v2800_v17  ;;  %3133 = vmatmul.f32.gmra.mxu2 %v5766_v43 }
 0x3e9   : > { %v2803_v52 = vpop.f32.mrf.mxu3  ;;  %3331 = vmatmul.f32.gmra.mxu0 %v4382_v35  ;;  %v2976_v35 = vadd.f32 %v5121_v48, %v5129_v10 }
 0x3eb   : > { %v3354_v34 = vpop.f32.mrf.mxu1  ;;  %v2721_v40 = vpop.f32.mrf.mxu2 }
 0x3ec   : > { %v2722_v26 = vadd.f32 %v2721_v40, %v5133_v58 }
 0x3ee   : > { %v3272_v18 = vpop.f32.mrf.mxu0  ;;  %v2804_v23 = vadd.f32 %v2803_v52, %v2722_v26 }
 0x3f0   : > { %3480 = vst [vmem:[%s5145_s15 + $0x78] sm:$0xff] %v2804_v23 }
 0x3f1   : > { %v3158_v55 = vpop.f32.mrf.mxu3 }
 0x3f3   : > { %v5273_v16 = vpop.f32.mrf.mxu1  ;;  %v3059_v58 = vpop.f32.mrf.mxu2 }
 0x3f4   : > { %v3060_v1 = vadd.f32 %v3059_v58, %v2976_v35 }
 0x3f6   : > { %v5293_v51 = vpop.f32.mrf.mxu0  ;;  %v3159_v33 = vadd.f32 %v3158_v55, %v3060_v1 }
 0x3f9   : > { %v5291_v11 = vpop.f32.mrf.mxu3 }
 0x3fb   : > { %v5295_v54 = vpop.f32.mrf.mxu1 }
 0x3fc   : > { %3912 = shalt.err (!%p3909_p3)
}
 0x3fd   : > { %s4069_s15 = smov 128   ;;  %s4070_s13 = smov 8   ;;  %v3273_v48 = vadd.f32 %v3272_v18, %v3159_v33  ;;  %v2980_v10 = vadd.f32 %v5131_v57, %v5140_v47 }
 0x3fe   : > { %3825 = dma.vmem_to_hbm [thread:$0]  (%p4146_p5), %s3548_s26, 2048, %s3550_s17, %s5300_s9, %s4069_s15, %s4069_s15, %s4070_s13  }
 0x3ff   : > { %s5768_s20 = scalar_lea.hbm %s5466_s5, %s5277_s16  ;;  %s3529_s19 = scalar_lea.hbm %s5463_s2, %s5277_s16  ;;  %v3355_v7 = vadd.f32 %v3354_v34, %v3273_v48 }
 0x400   : > { %s3583_s12 = sshll.u32 %s5768_s20, 4  ;;  %s5769_s3 = sand.u32 1, %s4127_s25   ;;  %s3584_s12 = int_to_ptr.hbm [resolvable:$true] %s3583_s12 }
 0x401   : > { %s5329_s30 = scalar_lea.sflag [#allocation8], %s5769_s3  ;;  %s3927_s26 = sshra.s32 %s3584_s12, 4  ;;  %s3928_s26 = int_to_ptr.hbm [resolvable:$true] %s3927_s26 }
 0x402   : > { %s3929_s17 = scalar_lea.hbm %s3928_s26, 128  ;;  %s3933_s20 = scalar_lea.hbm %s5466_s5, 256 }
 0x403   : > { %p3930_p4 = scmp.ne.s32.totalorder %s3928_s26, %s3929_s17  ;;  %p3934_p9 = scmp.lt.s32.totalorder %s3928_s26, %s5466_s5 }
 0x404   : > { %p3935_p10 = scmp.lt.s32.totalorder %s3933_s20, %s3929_s17 }
 0x405   : > { %p3931_p7 = pnand %p3930_p4, %p4146_p5 }
 0x406   : > { %p3936_p11 = por %p3935_p10, %p3934_p9 }
 0x407   : > { %p3932_p8 = pneg %p3931_p7 }
 0x409   : > { %p3937_p12 = pnand %p3936_p11, %p3932_p8 }
 0x40b   : > { %3940 = shalt.err (!%p3937_p12)
}
 0x40c   : > { %3827 = dma.vmem_to_hbm [thread:$0]  (%p4146_p5), %s3582_s18, 2048, %s3584_s12, %s5329_s30, %s4069_s15, %s4069_s15, %s4070_s13   ;;  %v3064_v57 = vpop.f32.mrf.mxu2  ;;  %v3170_v14 = vpop.f32.mrf.mxu3 }
 0x40d   : > { %s3530_s3 = sshll.u32 %s4559_s29, 4  ;;  %s3532_s25 = sshll.u32 %s3529_s19, 4  ;;  %v3065_v47 = vadd.f32 %v3064_v57, %v2980_v10  ;;  %v3280_v27 = vpop.f32.mrf.mxu0  ;;  %s3531_s3 = int_to_ptr.vmem [resolvable:$true] %s3530_s3  ;;  %s3533_s25 = int_to_ptr.hbm [resolvable:$true] %s3532_s25 }
 0x40e   : > { %s5347_s1 = scalar_lea.vmem [#allocation9], %s4550_s28  ;;  %s5770_s26 = sand.u32 1, %s4059_s22  }
 0x40f   : > { %3481 = vst [vmem:[%s5347_s1] sm:$0xff] %v3355_v7  ;;  %s3498_s17 = scalar_lea.sflag [#allocation3], %s5770_s26  ;;  %s3955_s0 = sshra.s32 %s3533_s25, 4  ;;  %s3956_s0 = int_to_ptr.hbm [resolvable:$true] %s3955_s0 }
 0x410   : > { %s3957_s20 = scalar_lea.hbm %s3956_s0, 128  ;;  %s3961_s28 = scalar_lea.hbm %s5463_s2, 256 }
 0x411   : > { %p3958_p13 = scmp.ne.s32.totalorder %s3956_s0, %s3957_s20  ;;  %p3962_p2 = scmp.lt.s32.totalorder %s3956_s0, %s5463_s2 }
 0x412   : > { %p3963_p3 = scmp.lt.s32.totalorder %s3961_s28, %s3957_s20 }
 0x413   : > { %p3959_p0 = pnand %p3958_p13, %p4146_p5 }
 0x414   : > { %p3964_p4 = por %p3963_p3, %p3962_p2 }
 0x415   : > { %p3960_p1 = pneg %p3959_p0 }
 0x417   : > { %p3965_p7 = pnand %p3964_p4, %p3960_p1 }
 0x419   : > { %3968 = shalt.err (!%p3965_p7)
}
 0x41a   : > { %3824 = dma.vmem_to_hbm [thread:$0]  (%p4146_p5), %s3531_s3, 2048, %s3533_s25, %s3498_s17, %s4069_s15, %s4069_s15, %s4070_s13   ;;  %v3165_v49 = vadd.f32 %v5291_v11, %v3065_v47  ;;  %v3366_v9 = vpop.f32.mrf.mxu1 }
 0x41b   : > { %s3563_s26 = scalar_lea.hbm %s5465_s4, %s5277_s16  ;;  %s3564_s0 = sshll.u32 %s4931_s14, 4  ;;  %s3565_s0 = int_to_ptr.vmem [resolvable:$true] %s3564_s0 }
 0x41c   : > { %s3566_s20 = sshll.u32 %s3563_s26, 4  ;;  %v3277_v41 = vadd.f32 %v5293_v51, %v3165_v49  ;;  %s3989_s17 = scalar_lea.hbm %s5465_s4, 256  ;;  %s3567_s20 = int_to_ptr.hbm [resolvable:$true] %s3566_s20 }
 0x41d   : > { %s3983_s29 = sshra.s32 %s3567_s20, 4  ;;  %s3984_s29 = int_to_ptr.hbm [resolvable:$true] %s3983_s29 }
 0x41e   : > { %s3985_s18 = scalar_lea.hbm %s3984_s29, 128  ;;  %p3990_p11 = scmp.lt.s32.totalorder %s3984_s29, %s5465_s4 }
 0x41f   : > { %p3986_p8 = scmp.ne.s32.totalorder %s3984_s29, %s3985_s18  ;;  %p3991_p12 = scmp.lt.s32.totalorder %s3989_s17, %s3985_s18 }
 0x421   : > { %p3987_p9 = pnand %p3986_p8, %p4146_p5  ;;  %p3992_p13 = por %p3991_p12, %p3990_p11 }
 0x423   : > { %p3988_p10 = pneg %p3987_p9 }
 0x425   : > { %p3993_p0 = pnand %p3992_p13, %p3988_p10 }
 0x427   : > { %3996 = shalt.err (!%p3993_p0)
}
 0x428   : > { %3826 = dma.vmem_to_hbm [thread:$0]  (%p4146_p5), %s3565_s0, 2048, %s3567_s20, %s5300_s9, %s4069_s15, %s4069_s15, %s4070_s13   ;;  %v2984_v32 = vadd.f32 %v5142_v20, %v5153_v2  ;;  %v3359_v25 = vadd.f32 %v5273_v16, %v3277_v41  ;;  %v3069_v29 = vpop.f32.mrf.mxu2  ;;  %v3176_v59 = vpop.f32.mrf.mxu3  ;;  %v2988_v30 = vadd.f32 %v5155_v38, %v5163_v19  ;;  %v2992_v52 = vadd.f32 %v5165_v36, %v5173_v0 }
 0x429   : > { %v3284_v45 = vpop.f32.mrf.mxu0  ;;  %v3370_v53 = vpop.f32.mrf.mxu1  ;;  %v2996_v55 = vadd.f32 %v5175_v56, %v5183_v3  ;;  %v3000_v11 = vadd.f32 %v5185_v21, %v5193_v39  ;;  %v3004_v57 = vadd.f32 %v5195_v4, %v5203_v37  ;;  %s3597_s19 = scalar_lea.hbm %s5467_s6, %s5277_s16  ;;  %s3598_s10 = sshll.u32 %s5347_s1, 4  ;;  %s3599_s10 = int_to_ptr.vmem [resolvable:$true] %s3598_s10 }
 0x42a   : > { %3482 = vst [vmem:[%s5347_s1 + $0x8] sm:$0xff] %v3359_v25  ;;  %v3070_v61 = vadd.f32 %v3069_v29, %v2984_v32  ;;  %s3600_s11 = sshll.u32 %s3597_s19, 4  ;;  %s4017_s16 = scalar_lea.hbm %s5467_s6, 256  ;;  %s3601_s11 = int_to_ptr.hbm [resolvable:$true] %s3600_s11 }
 0x42b   : > { %s4011_s26 = sshra.s32 %s3601_s11, 4  ;;  %s4012_s26 = int_to_ptr.hbm [resolvable:$true] %s4011_s26 }
 0x42c   : > { %v3171_v62 = vadd.f32 %v3170_v14, %v3070_v61  ;;  %s4013_s0 = scalar_lea.hbm %s4012_s26, 128  ;;  %p4018_p4 = scmp.lt.s32.totalorder %s4012_s26, %s5467_s6 }
 0x42d   : > { %p4014_p1 = scmp.ne.s32.totalorder %s4012_s26, %s4013_s0  ;;  %p4019_p7 = scmp.lt.s32.totalorder %s4017_s16, %s4013_s0 }
 0x42e   : > { %v3281_v28 = vadd.f32 %v3280_v27, %v3171_v62 }
 0x42f   : > { %p4015_p2 = pnand %p4014_p1, %p4146_p5  ;;  %p4020_p8 = por %p4019_p7, %p4018_p4 }
 0x430   : > { %v3363_v12 = vadd.f32 %v5295_v54, %v3281_v28  ;;  %v3074_v22 = vpop.f32.mrf.mxu2  ;;  %v3182_v20 = vpop.f32.mrf.mxu3 }
 0x431   : > { %v3075_v63 = vadd.f32 %v3074_v22, %v2988_v30  ;;  %v3288_v2 = vpop.f32.mrf.mxu0  ;;  %v3374_v5 = vpop.f32.mrf.mxu1  ;;  %p4016_p3 = pneg %p4015_p2 }
 0x432   : > { %3483 = vst [vmem:[%s5347_s1 + $0x10] sm:$0xff] %v3363_v12 }
 0x433   : > { %v3177_v44 = vadd.f32 %v3176_v59, %v3075_v63  ;;  %p4021_p9 = pnand %p4020_p8, %p4016_p3 }
 0x435   : > { %v3285_v6 = vadd.f32 %v3284_v45, %v3177_v44 }
 0x437   : > { %v3367_v13 = vadd.f32 %v3366_v9, %v3285_v6 }
 0x438   : > { %v3079_v17 = vpop.f32.mrf.mxu2  ;;  %v3188_v43 = vpop.f32.mrf.mxu3 }
 0x439   : > { %3484 = vst [vmem:[%s5347_s1 + $0x18] sm:$0xff] %v3367_v13  ;;  %v3080_v34 = vadd.f32 %v3079_v17, %v2992_v52  ;;  %v3292_v38 = vpop.f32.mrf.mxu0  ;;  %v3378_v40 = vpop.f32.mrf.mxu1 }
 0x43b   : > { %v3183_v19 = vadd.f32 %v3182_v20, %v3080_v34 }
 0x43d   : > { %v3289_v26 = vadd.f32 %v3288_v2, %v3183_v19 }
 0x43f   : > { %v3371_v18 = vadd.f32 %v3370_v53, %v3289_v26 }
 0x440   : > { %v3084_v23 = vpop.f32.mrf.mxu2  ;;  %v3194_v35 = vpop.f32.mrf.mxu3 }
 0x441   : > { %3485 = vst [vmem:[%s5347_s1 + $0x20] sm:$0xff] %v3371_v18  ;;  %v3085_v16 = vadd.f32 %v3084_v23, %v2996_v55  ;;  %v3296_v58 = vpop.f32.mrf.mxu0  ;;  %v3382_v0 = vpop.f32.mrf.mxu1 }
 0x443   : > { %v3189_v36 = vadd.f32 %v3188_v43, %v3085_v16 }
 0x445   : > { %v3293_v1 = vadd.f32 %v3292_v38, %v3189_v36 }
 0x447   : > { %v3375_v51 = vadd.f32 %v3374_v5, %v3293_v1 }
 0x448   : > { %v3089_v33 = vpop.f32.mrf.mxu2  ;;  %v3200_v48 = vpop.f32.mrf.mxu3 }
 0x449   : > { %3486 = vst [vmem:[%s5347_s1 + $0x28] sm:$0xff] %v3375_v51  ;;  %v3090_v54 = vadd.f32 %v3089_v33, %v3000_v11  ;;  %v3300_v10 = vpop.f32.mrf.mxu0  ;;  %v3386_v7 = vpop.f32.mrf.mxu1 }
 0x44b   : > { %v3195_v56 = vadd.f32 %v3194_v35, %v3090_v54 }
 0x44d   : > { %v3297_v3 = vadd.f32 %v3296_v58, %v3195_v56 }
 0x44f   : > { %v3379_v47 = vadd.f32 %v3378_v40, %v3297_v3 }
 0x450   : > { %v3094_v14 = vpop.f32.mrf.mxu2  ;;  %v3206_v49 = vpop.f32.mrf.mxu3 }
 0x451   : > { %3487 = vst [vmem:[%s5347_s1 + $0x30] sm:$0xff] %v3379_v47  ;;  %v3095_v27 = vadd.f32 %v3094_v14, %v3004_v57  ;;  %v3304_v21 = vpop.f32.mrf.mxu0  ;;  %v3390_v25 = vpop.f32.mrf.mxu1 }
 0x453   : > { %v3201_v39 = vadd.f32 %v3200_v48, %v3095_v27 }
 0x455   : > { %v3301_v9 = vadd.f32 %v3300_v10, %v3201_v39 }
 0x457   : > { %v3383_v41 = vadd.f32 %v3382_v0, %v3301_v9 }
 0x458   : > { %v3099_v32 = vpop.f32.mrf.mxu2  ;;  %v3212_v61 = vpop.f32.mrf.mxu3 }
 0x459   : > { %3488 = vst [vmem:[%s5347_s1 + $0x38] sm:$0xff] %v3383_v41  ;;  %v3100_v29 = vadd.f32 %v3099_v32, %v5211_v24  ;;  %v3308_v59 = vpop.f32.mrf.mxu0  ;;  %v3394_v12 = vpop.f32.mrf.mxu1 }
 0x45b   : > { %v3207_v45 = vadd.f32 %v3206_v49, %v3100_v29 }
 0x45d   : > { %v3305_v4 = vadd.f32 %v3304_v21, %v3207_v45 }
 0x45f   : > { %v3387_v37 = vadd.f32 %v3386_v7, %v3305_v4 }
 0x460   : > { %v3104_v62 = vpop.f32.mrf.mxu2  ;;  %v3218_v28 = vpop.f32.mrf.mxu3 }
 0x461   : > { %3489 = vst [vmem:[%s5347_s1 + $0x40] sm:$0xff] %v3387_v37  ;;  %v3105_v53 = vadd.f32 %v3104_v62, %v5219_v60  ;;  %v3312_v30 = vpop.f32.mrf.mxu0  ;;  %v3398_v52 = vpop.f32.mrf.mxu1 }
 0x463   : > { %v3213_v22 = vadd.f32 %v3212_v61, %v3105_v53 }
 0x465   : > { %v3309_v63 = vadd.f32 %v3308_v59, %v3213_v22 }
 0x467   : > { %v3391_v20 = vadd.f32 %v3390_v25, %v3309_v63 }
 0x468   : > { %v3109_v2 = vpop.f32.mrf.mxu2  ;;  %v3224_v44 = vpop.f32.mrf.mxu3 }
 0x469   : > { %3490 = vst [vmem:[%s5347_s1 + $0x48] sm:$0xff] %v3391_v20  ;;  %v3110_v24 = vadd.f32 %v3109_v2, %v5227_v50  ;;  %v3316_v5 = vpop.f32.mrf.mxu0  ;;  %v3402_v26 = vpop.f32.mrf.mxu1 }
 0x46b   : > { %v3219_v6 = vadd.f32 %v3218_v28, %v3110_v24 }
 0x46d   : > { %v3313_v13 = vadd.f32 %v3312_v30, %v3219_v6 }
 0x46f   : > { %v3395_v17 = vadd.f32 %v3394_v12, %v3313_v13 }
 0x470   : > { %v3114_v34 = vpop.f32.mrf.mxu2  ;;  %v3230_v43 = vpop.f32.mrf.mxu3 }
 0x471   : > { %3491 = vst [vmem:[%s5347_s1 + $0x50] sm:$0xff] %v3395_v17  ;;  %v3115_v60 = vadd.f32 %v3114_v34, %v5235_v46  ;;  %v3320_v19 = vpop.f32.mrf.mxu0  ;;  %v3406_v1 = vpop.f32.mrf.mxu1 }
 0x473   : > { %v3225_v38 = vadd.f32 %v3224_v44, %v3115_v60 }
 0x475   : > { %v3317_v40 = vadd.f32 %v3316_v5, %v3225_v38 }
 0x477   : > { %v3399_v55 = vadd.f32 %v3398_v52, %v3317_v40 }
 0x478   : > { %v3119_v18 = vpop.f32.mrf.mxu2  ;;  %v3236_v16 = vpop.f32.mrf.mxu3 }
 0x479   : > { %3492 = vst [vmem:[%s5347_s1 + $0x58] sm:$0xff] %v3399_v55  ;;  %v3120_v50 = vadd.f32 %v3119_v18, %v5243_v15  ;;  %v3324_v58 = vpop.f32.mrf.mxu0  ;;  %v3410_v56 = vpop.f32.mrf.mxu1 }
 0x47b   : > { %v3231_v23 = vadd.f32 %v3230_v43, %v3120_v50 }
 0x47d   : > { %v3321_v35 = vadd.f32 %v3320_v19, %v3231_v23 }
 0x47f   : > { %v3403_v36 = vadd.f32 %v3402_v26, %v3321_v35 }
 0x480   : > { %v3124_v0 = vpop.f32.mrf.mxu2  ;;  %v3242_v33 = vpop.f32.mrf.mxu3 }
 0x481   : > { %3493 = vst [vmem:[%s5347_s1 + $0x60] sm:$0xff] %v3403_v36  ;;  %v3125_v46 = vadd.f32 %v3124_v0, %v5251_v42  ;;  %v3328_v15 = vpop.f32.mrf.mxu0  ;;  %v3414_v21 = vpop.f32.mrf.mxu1 }
 0x483   : > { %v3237_v11 = vadd.f32 %v3236_v16, %v3125_v46 }
 0x485   : > { %v3325_v51 = vadd.f32 %v3324_v58, %v3237_v11 }
 0x487   : > { %v3407_v54 = vadd.f32 %v3406_v1, %v3325_v51 }
 0x488   : > { %v3129_v48 = vpop.f32.mrf.mxu2  ;;  %v3248_v14 = vpop.f32.mrf.mxu3 }
 0x489   : > { %3494 = vst [vmem:[%s5347_s1 + $0x68] sm:$0xff] %v3407_v54  ;;  %v3130_v10 = vadd.f32 %v3129_v48, %v5259_v8  ;;  %v3332_v27 = vpop.f32.mrf.mxu0 }
 0x48b   : > { %v3243_v3 = vadd.f32 %v3242_v33, %v3130_v10 }
 0x48d   : > { %v3329_v7 = vadd.f32 %v3328_v15, %v3243_v3 }
 0x48f   : > { %v3411_v57 = vadd.f32 %v3410_v56, %v3329_v7 }
 0x490   : > { %v3134_v47 = vpop.f32.mrf.mxu2 }
 0x491   : > { %3495 = vst [vmem:[%s5347_s1 + $0x70] sm:$0xff] %v3411_v57  ;;  %v3135_v42 = vadd.f32 %v3134_v47, %v5267_v31 }
 0x493   : > { %v3249_v49 = vadd.f32 %v3248_v14, %v3135_v42 }
 0x495   : > { %v3333_v8 = vadd.f32 %v3332_v27, %v3249_v49 }
 0x497   : > { %v3415_v39 = vadd.f32 %v3414_v21, %v3333_v8 }
 0x499   : > { %3496 = vst [vmem:[%s5347_s1 + $0x78] sm:$0xff] %v3415_v39 }
 0x49a   : > { %4024 = shalt.err (!%p4021_p9)
}
 0x49b   : > { %3828 = dma.vmem_to_hbm [thread:$0]  (%p4146_p5), %s3599_s10, 2048, %s3601_s11, %s5329_s30, %s4069_s15, %s4069_s15, %s4070_s13  }
 0x49c PF: > { %p3850_p10 = scmp.ge.s32.totalorder %s4067_s24, 2  ;;  %s3615_s1 = sand.u32 1, %s4055_s21  }
 0x49d   : > { %s3616_s25 = scalar_lea.sflag [#allocation3], %s3615_s1 }
 0x49e   : > { %p3835_p11 = pnand %p3850_p10, %p4150_p6 }
 0x4a0   : > { %p3836_p12 = pneg %p3835_p11 }
 0x4a2   : > { %4042 = dma.done.wait (%p3836_p12), %s3616_s25, 2048  }
 0x4a3   : > { %4044 = vsyncadd (%p3836_p12), %s3616_s25, 4294965248  ;;  %s5771_s17 = sadd.s32 4294967294, %s4067_s24  }
 0x4a4   : > { %s3625_s7 = sand.u32 1, %s5771_s17  }
 0x4a5   : > { %s3626_s28 = scalar_lea.sflag [#allocation5], %s3625_s7 }
 0x4a6   : > { %4046 = dma.done.wait (%p3836_p12), %s3626_s28, 4096  }
 0x4a7   : > { %4048 = vsyncadd (%p3836_p12), %s3626_s28, 4294963200  ;;  %s3646_s12 = scalar_lea.sflag [#allocation8], %s3625_s7 }
 0x4a8   : > { %4050 = dma.done.wait (%p3836_p12), %s3646_s12, 4096  }
 0x4a9   : > { %4052 = vsyncadd (%p3836_p12), %s3646_s12, 4294963200  ;;  %s5772_s30 = sld [smem:[#allocation13_spill]]  ;;  %p23_p5 = scmp.ge.s32.totalorder %s4131_s27, 4  }
 0x4aa   : > { %s5773_s21 = smov %s4059_s22  ;;  %s5774_s22 = smov %s4063_s23 }
 0x4ab   : > { %s5776_s24 = smov %s4131_s27  ;;  %25 = sbr.rel (!%p23_p5) target bundleno = 11 (0xb), region = 127 }
 0x4af   : > { %s5775_s23 = smov %s5772_s30 }
 0x4b0   :  { %3662 = vsyncpa [#allocation3], 1 }
 0x4b1   :  { %3664 = vsyncpa [#allocation3 + $0x1], 1 }
 0x4b2   :  { %3665 = vsyncpa [#allocation5], 1 }
 0x4b3   :  { %3667 = vsyncpa [#allocation5 + $0x1], 1 }
 0x4b4   :  { %3668 = vsyncpa [#allocation8], 1 }
 0x4b5   :  { %3670 = vsyncpa [#allocation8 + $0x1], 1 }

</bundles_post_ra>
